<compile_context>
chip_gen: v5e
topology: v5e:2x2
jax: 0.10.0
libtpu: 0.0.40
codegen_flags: <defaults>
</compile_context>

<pallas_src>
import jax
import jax.numpy as jnp
from jax.experimental import pallas as pl
from jax.experimental.pallas import tpu as pltpu


def _conv1x1_kernel(x_ref, w_ref, o_ref):
    # x_ref: (Cin, H*W) activations, w_ref: (Cout, Cin) weights (bf16),
    # o_ref: (Cout, H*W).  out = W @ X, f32 accumulation on the MXU.
    x = x_ref[...].astype(w_ref.dtype)
    o_ref[...] = jnp.dot(
        w_ref[...], x, preferred_element_type=jnp.float32
    ).astype(o_ref.dtype)


def prepare_weight(weight_oi11: jax.Array, compute_dtype=jnp.bfloat16) -> jax.Array:
    """One-time weight prep: (Cout, Cin, 1, 1) -> (Cout, Cin), cast to compute dtype.

    Done once at parameter-setup time so the bf16 weight stays resident and
    every conv call DMAs half the bytes of the original f32 weight.
    """
    cout, cin = weight_oi11.shape[0], weight_oi11.shape[1]
    return weight_oi11.reshape(cout, cin).astype(compute_dtype)


@jax.jit
def conv2d_1x1(x_nchw: jax.Array, w_oc: jax.Array) -> jax.Array:
    """1x1 conv, stride 1, no bias. x_nchw: (N, Cin, H, W), w_oc: (Cout, Cin)."""
    n, cin, h, w = x_nchw.shape
    cout = w_oc.shape[0]
    hw = h * w
    out_dtype = x_nchw.dtype

    cost = pl.CostEstimate(
        flops=2 * n * cout * cin * hw,
        transcendentals=0,
        bytes_accessed=(
            x_nchw.size * x_nchw.dtype.itemsize
            + w_oc.size * w_oc.dtype.itemsize
            + n * cout * hw * jnp.dtype(out_dtype).itemsize
        ),
    )

    if n == 1:
        # Grid-free path: whole operands live in VMEM, single MXU matmul.
        x_mat = x_nchw.reshape(cin, hw)  # zero-copy reshape for N == 1
        out = pl.pallas_call(
            _conv1x1_kernel,
            out_shape=jax.ShapeDtypeStruct((cout, hw), out_dtype),
            cost_estimate=cost,
        )(x_mat, w_oc)
        return out.reshape(1, cout, h, w)  # zero-copy

    # General batch: one grid step per image; weight block is reused across
    # steps, and the batch axis is "parallel" (megacore sharding on v7x).
    x3 = x_nchw.reshape(n, cin, hw)  # zero-copy
    out = pl.pallas_call(
        _conv1x1_kernel,
        out_shape=jax.ShapeDtypeStruct((n, cout, hw), out_dtype),
        grid=(n,),
        in_specs=[
            pl.BlockSpec((None, cin, hw), lambda i: (i, 0, 0)),
            pl.BlockSpec((cout, cin), lambda i: (0, 0)),
        ],
        out_specs=pl.BlockSpec((None, cout, hw), lambda i: (i, 0, 0)),
        compiler_params=pltpu.CompilerParams(
            dimension_semantics=("parallel",)
        ),
        cost_estimate=cost,
    )(x3, w_oc)
    return out.reshape(n, cout, h, w)  # zero-copy


if __name__ == "__main__":
    key = jax.random.PRNGKey(0)
    kx, kw = jax.random.split(key)

    # Shapes implied by the module's forward: x186 ~ (1, 832, 7, 7)
    N, CIN, H, W = 1, 832, 7, 7
    COUT = 384

    x = jax.random.normal(kx, (N, CIN, H, W), dtype=jnp.float32)
    # Deterministic Conv2d weight (kaiming-uniform-like scale), (Cout, Cin, 1, 1)
    bound = 1.0 / (CIN ** 0.5)
    weight = jax.random.uniform(
        kw, (COUT, CIN, 1, 1), dtype=jnp.float32, minval=-bound, maxval=bound
    )

    # One-time weight preparation (bf16, (Cout, Cin)) -- stays resident.
    w_oc = prepare_weight(weight)

    out = conv2d_1x1(x, w_oc)
    out = jax.block_until_ready(out)

    # Sanity check against a plain-JAX f32 1x1-conv reference (bf16 matmul
    # with f32 accumulation over K=832 -> relative error well below 1e-2).
    ref = jnp.einsum("nchw,oc->nohw", x, weight.reshape(COUT, CIN))
    assert out.shape == (N, COUT, H, W)
    assert jnp.allclose(out, ref, atol=5e-2, rtol=5e-2)

    # Also exercise the general-batch (grid) path at a small batch.
    xb = jax.random.normal(jax.random.PRNGKey(1), (2, CIN, H, W), dtype=jnp.float32)
    outb = jax.block_until_ready(conv2d_1x1(xb, w_oc))
    refb = jnp.einsum("nchw,oc->nohw", xb, weight.reshape(COUT, CIN))
    assert outb.shape == (2, COUT, H, W)
    assert jnp.allclose(outb, refb, atol=5e-2, rtol=5e-2)

    print("KERNEL_OK")
</pallas_src>

<mosaic_0001>
module attributes {stable_mosaic.version = 11 : i64} {
  func.func @_conv1x1_kernel(%arg0: memref<832x49xf32, #tpu.memory_space<vmem>>, %arg1: memref<384x832xbf16, #tpu.memory_space<vmem>>, %arg2: memref<384x49xf32, #tpu.memory_space<vmem>>) attributes {dimension_semantics = [], scalar_prefetch = 0 : i64, scratch_operands = 0 : i64, tpu.core_type = #tpu.core_type<tc>} {
    %c0 = arith.constant 0 : index
    %c0_0 = arith.constant 0 : index
    %0 = vector.load %arg0[%c0, %c0_0] : memref<832x49xf32, #tpu.memory_space<vmem>>, vector<832x49xf32>
    %1 = arith.truncf %0 : vector<832x49xf32> to vector<832x49xbf16>
    %c0_1 = arith.constant 0 : index
    %c0_2 = arith.constant 0 : index
    %2 = vector.load %arg1[%c0_1, %c0_2] : memref<384x832xbf16, #tpu.memory_space<vmem>>, vector<384x832xbf16>
    %cst = arith.constant dense<0.000000e+00> : vector<384x49xf32>
    %3 = tpu.matmul %2, %1, %cst {dimension_numbers = #tpu.dot_dimension_numbers<[1], [0], [0], [1], [0, 0, 1, 1], [], []>} : vector<384x832xbf16>, vector<832x49xbf16>, vector<384x49xf32> -> vector<384x49xf32>
    %c0_3 = arith.constant 0 : index
    %c0_4 = arith.constant 0 : index
    %4 = vector.load %arg2[%c0_3, %c0_4] : memref<384x49xf32, #tpu.memory_space<vmem>>, vector<384x49xf32>
    tpu.vector_store %arg2[%c0_3, %c0_4], %3 {strides = array<i32>} : memref<384x49xf32, #tpu.memory_space<vmem>>, vector<384x49xf32>,
    return
  }
}

</mosaic_0001>

<bundles_post_ra>
// kernel: conv2d_1x1.1
= control target key start
LH: loop header
LB: loop body
LE: loop exit
PB: predicated region body
PF: predicated region fallthrough
CT: control target
= control target key end

     0   :  { %vm1200_vm0 = vcmask 523264   ;;  %vm2176_vm1 = vcmask 400384   ;;  %s4948_s0 = inlined_call_operand.vmem [shape: f32[832,49], index: 0, kind: input, shape index: {}]   ;;  %s4949_s1 = inlined_call_operand.vmem [shape: bf16[384,832], index: 1, kind: input, shape index: {}]   ;;  %s4950_s2 = inlined_call_operand.vmem [shape: f32[384,49], index: 2, kind: output, shape index: {}]  }
   0x1   :  { %v26_v0 = vld [vmem:[%s4948_s0 + $0x70] sm:$0xff]  ;;  %v27_v1 = vld [vmem:[%s4948_s0 + $0x78] sm:$0xff]  ;;  %v24_v9 = vld [vmem:[%s4948_s0 + $0x60] sm:$0xff] }
   0x2   :  { %v42_v2 = vld [vmem:[%s4948_s0 + $0xf0] sm:$0xff]  ;;  %v123_v3 = vpack.c.bf16 %v27_v1, %v26_v0  ;;  %v43_v4 = vld [vmem:[%s4948_s0 + $0xf8] sm:$0xff]  ;;  %v25_v10 = vld [vmem:[%s4948_s0 + $0x68] sm:$0xff] }
   0x3   :  { %v58_v5 = vld [vmem:[%s4948_s0 + $0x170] sm:$0xff]  ;;  %v59_v6 = vld [vmem:[%s4948_s0 + $0x178] sm:$0xff]  ;;  %v3150_v7 = vpack.c.bf16 %v43_v4, %v42_v2  ;;  %v40_v11 = vld [vmem:[%s4948_s0 + $0xe0] sm:$0xff]  ;;  %v122_v12 = vpack.c.bf16 %v25_v10, %v24_v9 }
   0x4   :  { %v3152_v8 = vpack.c.bf16 %v59_v6, %v58_v5  ;;  %1273 = vmatpush.bf16.msra.mxu0 %v123_v3  ;;  %3093 = vmatpush.bf16.msra.mxu3 %v123_v3  ;;  %v41_v13 = vld [vmem:[%s4948_s0 + $0xe8] sm:$0xff]  ;;  %v56_v14 = vld [vmem:[%s4948_s0 + $0x160] sm:$0xff]  ;;  %v22_v18 = vld [vmem:[%s4948_s0 + $0x50] sm:$0xff] }
   0x5   :  { %v57_v15 = vld [vmem:[%s4948_s0 + $0x168] sm:$0xff]  ;;  %1402 = vmatpush.bf16.msra.mxu1 %v3150_v7  ;;  %v3174_v16 = vpack.c.bf16 %v41_v13, %v40_v11  ;;  %v23_v19 = vld [vmem:[%s4948_s0 + $0x58] sm:$0xff]  ;;  %v38_v20 = vld [vmem:[%s4948_s0 + $0xd0] sm:$0xff] }
   0x6   :  { %1531 = vmatpush.bf16.msra.mxu2 %v3152_v8  ;;  %v3176_v17 = vpack.c.bf16 %v57_v15, %v56_v14  ;;  %v39_v21 = vld [vmem:[%s4948_s0 + $0xd8] sm:$0xff]  ;;  %v54_v22 = vld [vmem:[%s4948_s0 + $0x150] sm:$0xff]  ;;  %v121_v24 = vpack.c.bf16 %v23_v19, %v22_v18  ;;  %v20_v27 = vld [vmem:[%s4948_s0 + $0x40] sm:$0xff] }
   0x7   :  { %v55_v23 = vld [vmem:[%s4948_s0 + $0x158] sm:$0xff]  ;;  %v3198_v25 = vpack.c.bf16 %v39_v21, %v38_v20  ;;  %v21_v28 = vld [vmem:[%s4948_s0 + $0x48] sm:$0xff]  ;;  %v36_v29 = vld [vmem:[%s4948_s0 + $0xc0] sm:$0xff] }
   0x8   :  { %1274 = vmatpush.bf16.msra.mxu0 %v122_v12  ;;  %3094 = vmatpush.bf16.msra.mxu3 %v122_v12  ;;  %v3200_v26 = vpack.c.bf16 %v55_v23, %v54_v22  ;;  %v37_v30 = vld [vmem:[%s4948_s0 + $0xc8] sm:$0xff]  ;;  %v52_v31 = vld [vmem:[%s4948_s0 + $0x140] sm:$0xff]  ;;  %v120_v33 = vpack.c.bf16 %v21_v28, %v20_v27  ;;  %v18_v36 = vld [vmem:[%s4948_s0 + $0x30] sm:$0xff] }
   0x9   :  { %1403 = vmatpush.bf16.msra.mxu1 %v3174_v16  ;;  %v53_v32 = vld [vmem:[%s4948_s0 + $0x148] sm:$0xff]  ;;  %v3222_v34 = vpack.c.bf16 %v37_v30, %v36_v29  ;;  %v19_v37 = vld [vmem:[%s4948_s0 + $0x38] sm:$0xff]  ;;  %v34_v38 = vld [vmem:[%s4948_s0 + $0xb0] sm:$0xff] }
   0xa   :  { %1532 = vmatpush.bf16.msra.mxu2 %v3176_v17  ;;  %v3224_v35 = vpack.c.bf16 %v53_v32, %v52_v31  ;;  %v35_v39 = vld [vmem:[%s4948_s0 + $0xb8] sm:$0xff]  ;;  %v50_v40 = vld [vmem:[%s4948_s0 + $0x130] sm:$0xff]  ;;  %v119_v42 = vpack.c.bf16 %v19_v37, %v18_v36  ;;  %v16_v45 = vld [vmem:[%s4948_s0 + $0x20] sm:$0xff] }
   0xb   :  { %v51_v41 = vld [vmem:[%s4948_s0 + $0x138] sm:$0xff]  ;;  %v3246_v43 = vpack.c.bf16 %v35_v39, %v34_v38  ;;  %v17_v46 = vld [vmem:[%s4948_s0 + $0x28] sm:$0xff]  ;;  %v32_v47 = vld [vmem:[%s4948_s0 + $0xa0] sm:$0xff] }
   0xc   :  { %1275 = vmatpush.bf16.msra.mxu0 %v121_v24  ;;  %3095 = vmatpush.bf16.msra.mxu3 %v121_v24  ;;  %v3248_v44 = vpack.c.bf16 %v51_v41, %v50_v40  ;;  %v33_v48 = vld [vmem:[%s4948_s0 + $0xa8] sm:$0xff]  ;;  %v48_v49 = vld [vmem:[%s4948_s0 + $0x120] sm:$0xff]  ;;  %v118_v51 = vpack.c.bf16 %v17_v46, %v16_v45  ;;  %v14_v54 = vld [vmem:[%s4948_s0 + $0x10] sm:$0xff] }
   0xd   :  { %1404 = vmatpush.bf16.msra.mxu1 %v3198_v25  ;;  %v49_v50 = vld [vmem:[%s4948_s0 + $0x128] sm:$0xff]  ;;  %v3270_v52 = vpack.c.bf16 %v33_v48, %v32_v47  ;;  %v15_v55 = vld [vmem:[%s4948_s0 + $0x18] sm:$0xff]  ;;  %v30_v56 = vld [vmem:[%s4948_s0 + $0x90] sm:$0xff] }
   0xe   :  { %1533 = vmatpush.bf16.msra.mxu2 %v3200_v26  ;;  %v3272_v53 = vpack.c.bf16 %v49_v50, %v48_v49  ;;  %v31_v57 = vld [vmem:[%s4948_s0 + $0x98] sm:$0xff]  ;;  %v46_v58 = vld [vmem:[%s4948_s0 + $0x110] sm:$0xff]  ;;  %v117_v60 = vpack.c.bf16 %v15_v55, %v14_v54  ;;  %v12_v61 = vld [vmem:[%s4948_s0] sm:$0xff] }
   0xf   :  { %v47_v59 = vld [vmem:[%s4948_s0 + $0x118] sm:$0xff]  ;;  %v13_v62 = vld [vmem:[%s4948_s0 + $0x8] sm:$0xff]  ;;  %v3300_v63 = vpack.c.bf16 %v31_v57, %v30_v56  ;;  %v28_v1 = vld [vmem:[%s4948_s0 + $0x80] sm:$0xff] }
  0x10   :  { %1276 = vmatpush.bf16.msra.mxu0 %v120_v33  ;;  %3096 = vmatpush.bf16.msra.mxu3 %v120_v33  ;;  %v3302_v0 = vpack.c.bf16 %v47_v59, %v46_v58  ;;  %v29_v2 = vld [vmem:[%s4948_s0 + $0x88] sm:$0xff]  ;;  %v44_v3 = vld [vmem:[%s4948_s0 + $0x100] sm:$0xff]  ;;  %v2928_v6 = vld [vmem:[%s4949_s1 + $0x18] sm:$0xf0]  ;;  %v116_v12 = vpack.c.bf16 %v13_v62, %v12_v61 }
  0x11   :  { %1405 = vmatpush.bf16.msra.mxu1 %v3222_v34  ;;  %v45_v4 = vld [vmem:[%s4948_s0 + $0x108] sm:$0xff]  ;;  %v2231_v5 = vld [vmem:[%s4949_s1] sm:$0xf]  ;;  %v2735_v9 = vld [vmem:[%s4949_s1 + $0x3f0] sm:$0xf]  ;;  %v3342_v18 = vpack.c.bf16 %v29_v2, %v28_v1 }
  0x12   :  { %1534 = vmatpush.bf16.msra.mxu2 %v3224_v35  ;;  %v114_v10 = vld [vmem:[%s4948_s0 + $0x330] sm:$0xff]  ;;  %v115_v11 = vld [vmem:[%s4948_s0 + $0x338] sm:$0xff]  ;;  %v3054_v13 = vld [vmem:[%s4949_s1 + $0x408] sm:$0xf0]  ;;  %v3344_v19 = vpack.c.bf16 %v45_v4, %v44_v3  ;;  %v2232_v29 = vor.u32 %v2928_v6, %v2231_v5 }
  0x13   :  { %v2925_v14 = vld [vmem:[%s4949_s1 + $0x4] sm:$0xf]  ;;  %v2233_v15 = vld [vmem:[%s4949_s1 + $0x1c] sm:$0xf0]  ;;  %v2239_v20 = vld [vmem:[%s4949_s1 + $0x8] sm:$0xf]  ;;  %v167_v23 = vpack.c.bf16 %v115_v11, %v114_v10  ;;  %v2736_v30 = vor.u32 %v3054_v13, %v2735_v9 }
  0x14   :  { %1277 = vmatpush.bf16.msra.mxu0 %v119_v42  ;;  %3097 = vmatpush.bf16.msra.mxu3 %v119_v42  ;;  %v2929_v21 = vld [vmem:[%s4949_s1 + $0x20] sm:$0xf0]  ;;  %v90_v22 = vld [vmem:[%s4948_s0 + $0x270] sm:$0xff]  ;;  %v91_v24 = vld [vmem:[%s4948_s0 + $0x278] sm:$0xff]  ;;  %v2236_v31 = vor.u32 %v2925_v14, %v2233_v15 }
  0x15   :  { %1406 = vmatpush.bf16.msra.mxu1 %v3246_v43  ;;  %v106_v27 = vld [vmem:[%s4948_s0 + $0x2f0] sm:$0xff]  ;;  %v107_v28 = vld [vmem:[%s4948_s0 + $0x2f8] sm:$0xff]  ;;  %v2240_v32 = vor.u32 %v2929_v21, %v2239_v20  ;;  %v155_v33 = vpack.c.bf16 %v91_v24, %v90_v22  ;;  %v88_v37 = vld [vmem:[%s4948_s0 + $0x260] sm:$0xff] }
  0x16   :  { %1535 = vmatpush.bf16.msra.mxu2 %v3248_v44  ;;  %v163_v36 = vpack.c.bf16 %v107_v28, %v106_v27  ;;  %v89_v38 = vld [vmem:[%s4948_s0 + $0x268] sm:$0xff]  ;;  %v104_v39 = vld [vmem:[%s4948_s0 + $0x2e0] sm:$0xff]  ;;  %v2259_v42 = vld [vmem:[%s4949_s1 + $0x38] sm:$0xf] }
  0x17   :  { %v105_v40 = vld [vmem:[%s4948_s0 + $0x2e8] sm:$0xff]  ;;  %v2935_v45 = vld [vmem:[%s4949_s1 + $0x50] sm:$0xf0]  ;;  %v2261_v47 = vld [vmem:[%s4949_s1 + $0x54] sm:$0xf0] }
  0x18   :  { %1278 = vmatpush.bf16.msra.mxu0 %v118_v51  ;;  %3098 = vmatpush.bf16.msra.mxu3 %v118_v51  ;;  %v162_v41 = vpack.c.bf16 %v105_v40, %v104_v39  ;;  %v2763_v46 = vld [vmem:[%s4949_s1 + $0x428] sm:$0xf]  ;;  %v2267_v48 = vld [vmem:[%s4949_s1 + $0x40] sm:$0xf]  ;;  %v2936_v49 = vld [vmem:[%s4949_s1 + $0x58] sm:$0xf0]  ;;  %v2260_v50 = vor.u32 %v2935_v45, %v2259_v42 }
  0x19   :  { %1407 = vmatpush.bf16.msra.mxu1 %v3270_v52  ;;  %v2268_v55 = vor.u32 %v2936_v49, %v2267_v48  ;;  %v2287_v56 = vld [vmem:[%s4949_s1 + $0x70] sm:$0xf]  ;;  %v3068_v57 = vld [vmem:[%s4949_s1 + $0x478] sm:$0xf0]  ;;  %v2295_v59 = vld [vmem:[%s4949_s1 + $0x78] sm:$0xf] }
  0x1a   :  { %1536 = vmatpush.bf16.msra.mxu2 %v3272_v53  ;;  %v2289_v58 = vld [vmem:[%s4949_s1 + $0x8c] sm:$0xf0]  ;;  %v112_v2 = vld [vmem:[%s4948_s0 + $0x320] sm:$0xff]  ;;  %v113_v3 = vld [vmem:[%s4948_s0 + $0x328] sm:$0xff] }
  0x1b   :  { %v166_v4 = vpack.c.bf16 %v113_v3, %v112_v2  ;;  %v2949_v5 = vld [vmem:[%s4949_s1 + $0xc0] sm:$0xf0]  ;;  %v2819_v6 = vld [vmem:[%s4949_s1 + $0x498] sm:$0xf]  ;;  %v3075_v9 = vld [vmem:[%s4949_s1 + $0x4b0] sm:$0xf0] }
  0x1c   :  { %1279 = vmatpush.bf16.msra.mxu0 %v117_v60  ;;  %3099 = vmatpush.bf16.msra.mxu3 %v117_v60  ;;  %v2943_v60 = vld [vmem:[%s4949_s1 + $0x90] sm:$0xf0]  ;;  %v2323_v10 = vld [vmem:[%s4949_s1 + $0xb0] sm:$0xf]  ;;  %v2950_v11 = vld [vmem:[%s4949_s1 + $0xc8] sm:$0xf0]  ;;  %v2820_v13 = vor.u32 %v3075_v9, %v2819_v6 }
  0x1d   :  { %1408 = vmatpush.bf16.msra.mxu1 %v3300_v63  ;;  %v2296_v1 = vor.u32 %v2943_v60, %v2295_v59  ;;  %v2324_v15 = vor.u32 %v2950_v11, %v2323_v10  ;;  %v87_v20 = vld [vmem:[%s4948_s0 + $0x258] sm:$0xff]  ;;  %v2847_v27 = vld [vmem:[%s4949_s1 + $0x4d0] sm:$0xf]  ;;  %v2345_v28 = vld [vmem:[%s4949_s1 + $0xfc] sm:$0xf0] }
  0x1e   :  { %1537 = vmatpush.bf16.msra.mxu2 %v3302_v0  ;;  %v2956_v24 = vld [vmem:[%s4949_s1 + $0xf8] sm:$0xf0]  ;;  %v3089_v39 = vld [vmem:[%s4949_s1 + $0x520] sm:$0xf0]  ;;  %v2373_v40 = vld [vmem:[%s4949_s1 + $0x134] sm:$0xf0] }
  0x1f   :  { %v2964_v42 = vld [vmem:[%s4949_s1 + $0x138] sm:$0xf0]  ;;  %v85_v48 = vld [vmem:[%s4948_s0 + $0x248] sm:$0xff]  ;;  %v100_v49 = vld [vmem:[%s4948_s0 + $0x2c0] sm:$0xff] }
  0x20   :  { %1280 = vmatpush.bf16.msra.mxu0 %v116_v12  ;;  %3100 = vmatpush.bf16.msra.mxu3 %v116_v12  ;;  %v2971_v59 = vld [vmem:[%s4949_s1 + $0x170] sm:$0xf0]  ;;  %v2977_v2 = vld [vmem:[%s4949_s1 + $0x1a0] sm:$0xf0]  ;;  %v2974_v3 = vld [vmem:[%s4949_s1 + $0x18c] sm:$0xf] }
  0x21   :  { %1409 = vmatpush.bf16.msra.mxu1 %v3342_v18  ;;  %v2435_v6 = vld [vmem:[%s4949_s1 + $0x190] sm:$0xf]  ;;  %v2978_v9 = vld [vmem:[%s4949_s1 + $0x1a8] sm:$0xf0] }
  0x22   :  { %1538 = vmatpush.bf16.msra.mxu2 %v3344_v19  ;;  %v2436_v11 = vor.u32 %v2978_v9, %v2435_v6  ;;  %v2849_v6 = vld [vmem:[%s4949_s1 + $0x4ec] sm:$0xf0] }
  0x23   :  { %1281 = vmatmul.bf16.vlgmr.msra.gmra.mxu0 %v2232_v29  ;;  %1371 = vmatmul.bf16.vlgmr.msra.gmra.mxu3 %v2736_v30  ;;  %v2351_v29 = vld [vmem:[%s4949_s1 + $0xe8] sm:$0xf]  ;;  %v2957_v30 = vld [vmem:[%s4949_s1 + $0x100] sm:$0xf0]  ;;  %v2513_v9 = vld [vmem:[%s4949_s1 + $0x24c] sm:$0xf0] }
  0x24   :  { %3101 = vmatpush.bf16.msrb.mxu3 %v3150_v7  ;;  %1410 = vmatmul.bf16.vlgmr.msra.gmra.mxu1 %v2236_v31  ;;  %v154_v7 = vpack.c.bf16 %v89_v38, %v88_v37  ;;  %v2371_v37 = vld [vmem:[%s4949_s1 + $0x118] sm:$0xf]  ;;  %v2963_v38 = vld [vmem:[%s4949_s1 + $0x130] sm:$0xf0] }
  0x25   :  { %1539 = vmatmul.bf16.vlgmr.msra.gmra.mxu2 %v2240_v32  ;;  %1789 = vmatpush.bf16.msrb.mxu0 %v155_v33  ;;  %v2372_v45 = vor.u32 %v2963_v38, %v2371_v37 }
  0x26   :  { %2051 = vmatpush.bf16.msrb.mxu2 %v167_v23  ;;  %1918 = vmatpush.bf16.msrb.mxu1 %v163_v36  ;;  %v2343_v23 = vld [vmem:[%s4949_s1 + $0xe0] sm:$0xf]  ;;  %v2352_v36 = vor.u32 %v2957_v30, %v2351_v29  ;;  %v2985_v29 = vld [vmem:[%s4949_s1 + $0x1e0] sm:$0xf0] }
  0x27   :  { %v2344_v31 = vor.u32 %v2956_v24, %v2343_v23  ;;  %v3065_v23 = vld [vmem:[%s4949_s1 + $0x464] sm:$0xf]  ;;  %v2793_v24 = vld [vmem:[%s4949_s1 + $0x47c] sm:$0xf0] }
  0x28   :  { %3102 = vmatpush.bf16.msrb.mxu3 %v3174_v16  ;;  %v3061_v16 = vld [vmem:[%s4949_s1 + $0x440] sm:$0xf0] }
  0x29   :  { %1790 = vmatpush.bf16.msrb.mxu0 %v154_v7  ;;  %v2764_v51 = vor.u32 %v3061_v16, %v2763_v46  ;;  %v2960_v7 = vld [vmem:[%s4949_s1 + $0x11c] sm:$0xf] }
  0x2a   :  { %1919 = vmatpush.bf16.msrb.mxu1 %v162_v41  ;;  %2052 = vmatpush.bf16.msrb.mxu2 %v166_v4  ;;  %v2379_v41 = vld [vmem:[%s4949_s1 + $0x120] sm:$0xf]  ;;  %v2376_v16 = vor.u32 %v2960_v7, %v2373_v40  ;;  %v3058_v4 = vld [vmem:[%s4949_s1 + $0x42c] sm:$0xf] }
  0x2c   :  { %3103 = vmatpush.bf16.msrb.mxu3 %v3198_v25  ;;  %v2932_v25 = vld [vmem:[%s4949_s1 + $0x3c] sm:$0xf] }
  0x2d   :  { %v2264_v54 = vor.u32 %v2932_v25, %v2261_v47  ;;  %v2380_v25 = vor.u32 %v2964_v42, %v2379_v41  ;;  %v84_v47 = vld [vmem:[%s4948_s0 + $0x240] sm:$0xff] }
  0x30   :  { %3104 = vmatpush.bf16.msrb.mxu3 %v3222_v34  ;;  %v2942_v34 = vld [vmem:[%s4949_s1 + $0x88] sm:$0xf0] }
  0x31   :  { %v2288_v61 = vor.u32 %v2942_v34, %v2287_v56  ;;  %v2970_v56 = vld [vmem:[%s4949_s1 + $0x168] sm:$0xf0]  ;;  %v2967_v34 = vld [vmem:[%s4949_s1 + $0x154] sm:$0xf] }
  0x33   :  { %1286 = vmatmul.bf16.gmra.mxu0 %v2260_v50  ;;  %1376 = vmatmul.bf16.gmra.mxu3 %v2764_v51  ;;  %v152_v50 = vpack.c.bf16 %v85_v48, %v84_v47  ;;  %v101_v51 = vld [vmem:[%s4948_s0 + $0x2c8] sm:$0xff]  ;;  %v2821_v47 = vld [vmem:[%s4949_s1 + $0x4b4] sm:$0xf0] }
  0x34   :  { %3105 = vmatpush.bf16.msrb.mxu3 %v3246_v43  ;;  %1415 = vmatmul.bf16.gmra.mxu1 %v2264_v54  ;;  %v2791_v43 = vld [vmem:[%s4949_s1 + $0x460] sm:$0xf]  ;;  %v160_v54 = vpack.c.bf16 %v101_v51, %v100_v49  ;;  %v2485_v48 = vld [vmem:[%s4949_s1 + $0x214] sm:$0xf0] }
  0x35   :  { %1544 = vmatmul.bf16.gmra.mxu2 %v2268_v55  ;;  %v2792_v62 = vor.u32 %v3068_v57, %v2791_v43  ;;  %v2399_v55 = vld [vmem:[%s4949_s1 + $0x150] sm:$0xf]  ;;  %v3051_v43 = vld [vmem:[%s4949_s1 + $0x3f4] sm:$0xf]  ;;  %v2491_v49 = vld [vmem:[%s4949_s1 + $0x200] sm:$0xf] }
  0x36   :  { %v2737_v57 = vld [vmem:[%s4949_s1 + $0x40c] sm:$0xf0]  ;;  %v2400_v60 = vor.u32 %v2970_v56, %v2399_v55 }
  0x38   :  { %3106 = vmatpush.bf16.msrb.mxu3 %v3270_v52  ;;  %v2939_v52 = vld [vmem:[%s4949_s1 + $0x74] sm:$0xf] }
  0x3c   :  { %3107 = vmatpush.bf16.msrb.mxu3 %v3300_v63  ;;  %v2292_v63 = vor.u32 %v2939_v52, %v2289_v58  ;;  %v2401_v52 = vld [vmem:[%s4949_s1 + $0x16c] sm:$0xf0]  ;;  %v2407_v58 = vld [vmem:[%s4949_s1 + $0x158] sm:$0xf] }
  0x40   :  { %3108 = vmatpush.bf16.msrb.mxu3 %v3342_v18  ;;  %v86_v18 = vld [vmem:[%s4948_s0 + $0x250] sm:$0xff] }
  0x41   :  { %v153_v21 = vpack.c.bf16 %v87_v20, %v86_v18  ;;  %v82_v18 = vld [vmem:[%s4948_s0 + $0x230] sm:$0xff] }
  0x43   :  { %1291 = vmatmul.bf16.gmra.mxu0 %v2288_v61  ;;  %1381 = vmatmul.bf16.gmra.mxu3 %v2792_v62  ;;  %v2740_v61 = vor.u32 %v3051_v43, %v2737_v57  ;;  %v2404_v62 = vor.u32 %v2967_v34, %v2401_v52 }
  0x44   :  { %3109 = vmatpush.bf16.msra.mxu3 %v3152_v8  ;;  %1420 = vmatmul.bf16.gmra.mxu1 %v2292_v63  ;;  %v2315_v8 = vld [vmem:[%s4949_s1 + $0xa8] sm:$0xf]  ;;  %v2408_v63 = vor.u32 %v2971_v59, %v2407_v58 }
  0x45   :  { %1549 = vmatmul.bf16.gmra.mxu2 %v2296_v1  ;;  %v2316_v12 = vor.u32 %v2949_v5, %v2315_v8  ;;  %1791 = vmatpush.bf16.msrb.mxu0 %v153_v21  ;;  %v2427_v1 = vld [vmem:[%s4949_s1 + $0x188] sm:$0xf]  ;;  %v98_v21 = vld [vmem:[%s4948_s0 + $0x2b0] sm:$0xff] }
  0x46   :  { %v2765_v8 = vld [vmem:[%s4949_s1 + $0x444] sm:$0xf0] }
  0x47   :  { %v2429_v5 = vld [vmem:[%s4949_s1 + $0x1a4] sm:$0xf0] }
  0x48   :  { %3110 = vmatpush.bf16.msra.mxu3 %v3176_v17  ;;  %v2946_v17 = vld [vmem:[%s4949_s1 + $0xac] sm:$0xf]  ;;  %v2432_v10 = vor.u32 %v2974_v3, %v2429_v5  ;;  %v2511_v3 = vld [vmem:[%s4949_s1 + $0x230] sm:$0xf]  ;;  %v3079_v5 = vld [vmem:[%s4949_s1 + $0x4d4] sm:$0xf] }
  0x49   :  { %1792 = vmatpush.bf16.msrb.mxu0 %v152_v50  ;;  %v2992_v50 = vld [vmem:[%s4949_s1 + $0x218] sm:$0xf0] }
  0x4a   :  { %v2492_v52 = vor.u32 %v2992_v50, %v2491_v49 }
  0x4c   :  { %3111 = vmatpush.bf16.msra.mxu3 %v3200_v26  ;;  %v2317_v26 = vld [vmem:[%s4949_s1 + $0xc4] sm:$0xf0] }
  0x4d   :  { %v2320_v14 = vor.u32 %v2946_v17, %v2317_v26  ;;  %v2428_v17 = vor.u32 %v2977_v2, %v2427_v1  ;;  %v2768_v26 = vor.u32 %v3058_v4, %v2765_v8  ;;  %v2998_v4 = vld [vmem:[%s4949_s1 + $0x248] sm:$0xf0]  ;;  %v2995_v8 = vld [vmem:[%s4949_s1 + $0x234] sm:$0xf] }
  0x50   :  { %3112 = vmatpush.bf16.msra.mxu3 %v3224_v35  ;;  %v102_v35 = vld [vmem:[%s4948_s0 + $0x2d0] sm:$0xff] }
  0x53   :  { %1296 = vmatmul.bf16.gmra.mxu0 %v2316_v12  ;;  %1386 = vmatmul.bf16.gmra.mxu3 %v2820_v13  ;;  %v2455_v12 = vld [vmem:[%s4949_s1 + $0x1c0] sm:$0xf]  ;;  %v2984_v13 = vld [vmem:[%s4949_s1 + $0x1d8] sm:$0xf0] }
  0x54   :  { %3113 = vmatpush.bf16.msra.mxu3 %v3248_v44  ;;  %1425 = vmatmul.bf16.gmra.mxu1 %v2320_v14  ;;  %v103_v44 = vld [vmem:[%s4948_s0 + $0x2d8] sm:$0xff]  ;;  %v110_v14 = vld [vmem:[%s4948_s0 + $0x310] sm:$0xff]  ;;  %v2456_v30 = vor.u32 %v2984_v13, %v2455_v12  ;;  %v2512_v12 = vor.u32 %v2998_v4, %v2511_v3  ;;  %v2852_v13 = vor.u32 %v3079_v5, %v2849_v6  ;;  %v2567_v6 = vld [vmem:[%s4949_s1 + $0x2a0] sm:$0xf] }
  0x55   :  { %1554 = vmatmul.bf16.gmra.mxu2 %v2324_v15  ;;  %v161_v22 = vpack.c.bf16 %v103_v44, %v102_v35  ;;  %v111_v15 = vld [vmem:[%s4948_s0 + $0x318] sm:$0xff] }
  0x56   :  { %v165_v20 = vpack.c.bf16 %v111_v15, %v110_v14  ;;  %v83_v35 = vld [vmem:[%s4948_s0 + $0x238] sm:$0xff] }
  0x57   :  { %1920 = vmatpush.bf16.msrb.mxu1 %v161_v22  ;;  %v99_v44 = vld [vmem:[%s4948_s0 + $0x2b8] sm:$0xff]  ;;  %v2981_v22 = vld [vmem:[%s4949_s1 + $0x1c4] sm:$0xf] }
  0x58   :  { %3114 = vmatpush.bf16.msra.mxu3 %v3272_v53  ;;  %v3082_v53 = vld [vmem:[%s4949_s1 + $0x4e8] sm:$0xf0]  ;;  %2053 = vmatpush.bf16.msrb.mxu2 %v165_v20  ;;  %v71_v5 = vld [vmem:[%s4948_s0 + $0x1d8] sm:$0xff] }
  0x59   :  { %v2848_v32 = vor.u32 %v3082_v53, %v2847_v27  ;;  %v151_v27 = vpack.c.bf16 %v83_v35, %v82_v18  ;;  %v159_v53 = vpack.c.bf16 %v99_v44, %v98_v21  ;;  %v2516_v18 = vor.u32 %v2995_v8, %v2513_v9  ;;  %v80_v35 = vld [vmem:[%s4948_s0 + $0x220] sm:$0xff]  ;;  %v81_v21 = vld [vmem:[%s4948_s0 + $0x228] sm:$0xff]  ;;  %v70_v8 = vld [vmem:[%s4948_s0 + $0x1d0] sm:$0xff] }
  0x5a   :  { %v3012_v9 = vld [vmem:[%s4949_s1 + $0x2b8] sm:$0xf0] }
  0x5b   :  { %1921 = vmatpush.bf16.msrb.mxu1 %v160_v54  ;;  %1793 = vmatpush.bf16.msrb.mxu0 %v151_v27  ;;  %v97_v27 = vld [vmem:[%s4948_s0 + $0x2a8] sm:$0xff] }
  0x5c   :  { %3115 = vmatpush.bf16.msra.mxu3 %v3302_v0  ;;  %v2953_v0 = vld [vmem:[%s4949_s1 + $0xe4] sm:$0xf] }
  0x5d   :  { %v2348_v33 = vor.u32 %v2953_v0, %v2345_v28  ;;  %v2457_v0 = vld [vmem:[%s4949_s1 + $0x1dc] sm:$0xf0]  ;;  %v2463_v28 = vld [vmem:[%s4949_s1 + $0x1c8] sm:$0xf] }
  0x5f   :  { %1922 = vmatpush.bf16.msrb.mxu1 %v159_v53 }
  0x60   :  { %3116 = vmatpush.bf16.msra.mxu3 %v3344_v19  ;;  %v2875_v19 = vld [vmem:[%s4949_s1 + $0x508] sm:$0xf] }
  0x61   :  { %v2876_v46 = vor.u32 %v3089_v39, %v2875_v19 }
  0x63   :  { %1301 = vmatmul.bf16.gmra.mxu0 %v2344_v31  ;;  %1391 = vmatmul.bf16.gmra.mxu3 %v2848_v32  ;;  %v2796_v31 = vor.u32 %v3065_v23, %v2793_v24  ;;  %v96_v24 = vld [vmem:[%s4948_s0 + $0x2a0] sm:$0xff] }
  0x64   :  { %1430 = vmatmul.bf16.gmra.mxu1 %v2348_v33  ;;  %v2460_v33 = vor.u32 %v2981_v22, %v2457_v0  ;;  %v150_v22 = vpack.c.bf16 %v81_v21, %v80_v35  ;;  %v158_v53 = vpack.c.bf16 %v97_v27, %v96_v24  ;;  %v74_v0 = vld [vmem:[%s4948_s0 + $0x1f0] sm:$0xff]  ;;  %v2568_v21 = vor.u32 %v3012_v9, %v2567_v6 }
  0x65   :  { %1559 = vmatmul.bf16.gmra.mxu2 %v2352_v36  ;;  %v2464_v36 = vor.u32 %v2985_v29, %v2463_v28  ;;  %v75_v28 = vld [vmem:[%s4948_s0 + $0x1f8] sm:$0xff] }
  0x66   :  { %1794 = vmatpush.bf16.msrb.mxu0 %v150_v22  ;;  %1923 = vmatpush.bf16.msrb.mxu1 %v158_v53  ;;  %v147_v29 = vpack.c.bf16 %v75_v28, %v74_v0  ;;  %v108_v28 = vld [vmem:[%s4948_s0 + $0x300] sm:$0xff] }
  0x73   :  { %1306 = vmatmul.bf16.gmra.mxu0 %v2372_v45  ;;  %1396 = vmatmul.bf16.gmra.mxu3 %v2876_v46  ;;  %v2483_v45 = vld [vmem:[%s4949_s1 + $0x1f8] sm:$0xf]  ;;  %v2991_v46 = vld [vmem:[%s4949_s1 + $0x210] sm:$0xf0] }
  0x74   :  { %1435 = vmatmul.bf16.gmra.mxu1 %v2376_v16  ;;  %v2988_v16 = vld [vmem:[%s4949_s1 + $0x1fc] sm:$0xf]  ;;  %v2484_v55 = vor.u32 %v2991_v46, %v2483_v45  ;;  %v2541_v45 = vld [vmem:[%s4949_s1 + $0x284] sm:$0xf0]  ;;  %v2547_v46 = vld [vmem:[%s4949_s1 + $0x270] sm:$0xf] }
  0x75   :  { %1564 = vmatmul.bf16.gmra.mxu2 %v2380_v25  ;;  %v3072_v25 = vld [vmem:[%s4949_s1 + $0x49c] sm:$0xf]  ;;  %v2488_v57 = vor.u32 %v2988_v16, %v2485_v48  ;;  %v3006_v16 = vld [vmem:[%s4949_s1 + $0x288] sm:$0xf0] }
  0x76   :  { %v2824_v56 = vor.u32 %v3072_v25, %v2821_v47 }
  0x83   :  { %1311 = vmatmul.bf16.gmra.mxu0 %v2400_v60  ;;  %1500 = vmatmul.bf16.vlgmr.msrb.gmra.mxu3 %v2740_v61 }
  0x84   :  { %1440 = vmatmul.bf16.gmra.mxu1 %v2404_v62  ;;  %1660 = vmatpush.bf16.msrb.mxu3 %v147_v29  ;;  %v109_v29 = vld [vmem:[%s4948_s0 + $0x308] sm:$0xff] }
  0x85   :  { %1569 = vmatmul.bf16.gmra.mxu2 %v2408_v63 }
  0x93   :  { %1316 = vmatmul.bf16.gmra.mxu0 %v2428_v17  ;;  %1505 = vmatmul.bf16.gmra.mxu3 %v2768_v26  ;;  %v2519_v17 = vld [vmem:[%s4949_s1 + $0x238] sm:$0xf]  ;;  %v2999_v26 = vld [vmem:[%s4949_s1 + $0x250] sm:$0xf0] }
  0x94   :  { %1445 = vmatmul.bf16.gmra.mxu1 %v2432_v10  ;;  %v2520_v20 = vor.u32 %v2999_v26, %v2519_v17  ;;  %v145_v17 = vpack.c.bf16 %v71_v5, %v70_v8  ;;  %v3009_v26 = vld [vmem:[%s4949_s1 + $0x2a4] sm:$0xf] }
  0x95   :  { %1574 = vmatmul.bf16.gmra.mxu2 %v2436_v11 }
  0xa0   :  { %v1282_v32 = vpop.f32.mrf.mxu0 }
  0xa1   :  { %v1411_v37 = vpop.f32.mrf.mxu1 }
  0xa2   :  { %v1412_v38 = vadd.f32 %v1411_v37, %v1282_v32 }
  0xa3   :  { %1321 = vmatmul.bf16.gmra.mxu0 %v2456_v30  ;;  %1510 = vmatmul.bf16.gmra.mxu3 %v2796_v31 }
  0xa4   :  { %1450 = vmatmul.bf16.gmra.mxu1 %v2460_v33 }
  0xa5   :  { %1579 = vmatmul.bf16.gmra.mxu2 %v2464_v36 }
  0xa6   :  { %v3634_v19 = vpop.f32.mrf.mxu3 }
  0xa8   :  { %v1540_v39 = vpop.f32.mrf.mxu2  ;;  %v1284_v40 = vpop.f32.mrf.mxu0 }
  0xa9   :  { %v3636_v7 = vadd.f32 %v1540_v39, %v1412_v38  ;;  %v1413_v41 = vpop.f32.mrf.mxu1  ;;  %v2539_v38 = vld [vmem:[%s4949_s1 + $0x268] sm:$0xf]  ;;  %v3005_v39 = vld [vmem:[%s4949_s1 + $0x280] sm:$0xf0] }
  0xaa   :  { %v1414_v42 = vadd.f32 %v1413_v41, %v1284_v40  ;;  %v3002_v40 = vld [vmem:[%s4949_s1 + $0x26c] sm:$0xf]  ;;  %v2540_v48 = vor.u32 %v3005_v39, %v2539_v38  ;;  %v94_v38 = vld [vmem:[%s4948_s0 + $0x290] sm:$0xff]  ;;  %v95_v39 = vld [vmem:[%s4948_s0 + $0x298] sm:$0xff] }
  0xab   :  { %v3086_v41 = vld [vmem:[%s4949_s1 + $0x50c] sm:$0xf] }
  0xae   :  { %v3662_v51 = vpop.f32.mrf.mxu3 }
  0xb0   :  { %v1542_v54 = vpop.f32.mrf.mxu2  ;;  %v1287_v43 = vpop.f32.mrf.mxu0 }
  0xb1   :  { %v3664_v34 = vadd.f32 %v1542_v54, %v1414_v42  ;;  %v1416_v58 = vpop.f32.mrf.mxu1  ;;  %v2877_v42 = vld [vmem:[%s4949_s1 + $0x524] sm:$0xf0] }
  0xb2   :  { %v1417_v59 = vadd.f32 %v1416_v58, %v1287_v43  ;;  %v2880_v49 = vor.u32 %v3086_v41, %v2877_v42  ;;  %v72_v43 = vld [vmem:[%s4948_s0 + $0x1e0] sm:$0xff]  ;;  %v157_v41 = vpack.c.bf16 %v95_v39, %v94_v38 }
  0xb3   :  { %1326 = vmatmul.bf16.gmra.mxu0 %v2484_v55  ;;  %1515 = vmatmul.bf16.gmra.mxu3 %v2824_v56  ;;  %v2544_v55 = vor.u32 %v3002_v40, %v2541_v45  ;;  %v2548_v56 = vor.u32 %v3006_v16, %v2547_v46  ;;  %v68_v16 = vld [vmem:[%s4948_s0 + $0x1c0] sm:$0xff] }
  0xb4   :  { %1455 = vmatmul.bf16.gmra.mxu1 %v2488_v57  ;;  %v73_v57 = vld [vmem:[%s4948_s0 + $0x1e8] sm:$0xff] }
  0xb5   :  { %1584 = vmatmul.bf16.gmra.mxu2 %v2492_v52  ;;  %v146_v58 = vpack.c.bf16 %v73_v57, %v72_v43  ;;  %1924 = vmatpush.bf16.msrb.mxu1 %v157_v41  ;;  %v3016_v43 = vld [vmem:[%s4949_s1 + $0x2dc] sm:$0xf]  ;;  %v2771_v57 = vld [vmem:[%s4949_s1 + $0x430] sm:$0xf] }
  0xb6   :  { %v3666_v60 = vpop.f32.mrf.mxu3 }
  0xb7   :  { %1661 = vmatpush.bf16.msrb.mxu3 %v146_v58  ;;  %v2597_v58 = vld [vmem:[%s4949_s1 + $0x2f4] sm:$0xf0] }
  0xb8   :  { %v1545_v61 = vpop.f32.mrf.mxu2  ;;  %v1289_v63 = vpop.f32.mrf.mxu0  ;;  %v2600_v9 = vor.u32 %v3016_v43, %v2597_v58 }
  0xb9   :  { %v3668_v62 = vadd.f32 %v1545_v61, %v1417_v59  ;;  %v1418_v1 = vpop.f32.mrf.mxu1 }
  0xba   :  { %v1419_v2 = vadd.f32 %v1418_v1, %v1289_v63 }
  0xbb   :  { %1662 = vmatpush.bf16.msrb.mxu3 %v145_v17 }
  0xbe   :  { %v3694_v10 = vpop.f32.mrf.mxu3 }
  0xc0   :  { %v1547_v11 = vpop.f32.mrf.mxu2  ;;  %v1292_v15 = vpop.f32.mrf.mxu0 }
  0xc1   :  { %v3696_v14 = vadd.f32 %v1547_v11, %v1419_v2  ;;  %v1421_v44 = vpop.f32.mrf.mxu1  ;;  %v2743_v11 = vld [vmem:[%s4949_s1 + $0x3f8] sm:$0xf] }
  0xc2   :  { %v1422_v23 = vadd.f32 %v1421_v44, %v1292_v15  ;;  %v2575_v15 = vld [vmem:[%s4949_s1 + $0x2a8] sm:$0xf] }
  0xc3   :  { %1331 = vmatmul.bf16.gmra.mxu0 %v2512_v12  ;;  %1520 = vmatmul.bf16.gmra.mxu3 %v2852_v13  ;;  %v3055_v12 = vld [vmem:[%s4949_s1 + $0x410] sm:$0xf0]  ;;  %v2569_v13 = vld [vmem:[%s4949_s1 + $0x2bc] sm:$0xf0] }
  0xc4   :  { %1460 = vmatmul.bf16.gmra.mxu1 %v2516_v18  ;;  %v3013_v18 = vld [vmem:[%s4949_s1 + $0x2c0] sm:$0xf0]  ;;  %v2744_v44 = vor.u32 %v3055_v12, %v2743_v11  ;;  %v2572_v24 = vor.u32 %v3009_v26, %v2569_v13  ;;  %v66_v12 = vld [vmem:[%s4948_s0 + $0x1b0] sm:$0xff]  ;;  %v67_v13 = vld [vmem:[%s4948_s0 + $0x1b8] sm:$0xff] }
  0xc5   :  { %1589 = vmatmul.bf16.gmra.mxu2 %v2520_v20  ;;  %v2576_v27 = vor.u32 %v3013_v18, %v2575_v15  ;;  %v143_v15 = vpack.c.bf16 %v67_v13, %v66_v12  ;;  %v63_v13 = vld [vmem:[%s4948_s0 + $0x198] sm:$0xff] }
  0xc6   :  { %v3716_v30 = vpop.f32.mrf.mxu3 }
  0xc8   :  { %v1550_v31 = vpop.f32.mrf.mxu2  ;;  %v1294_v33 = vpop.f32.mrf.mxu0 }
  0xc9   :  { %v3718_v32 = vadd.f32 %v1550_v31, %v1422_v23  ;;  %v1423_v36 = vpop.f32.mrf.mxu1  ;;  %v164_v31 = vpack.c.bf16 %v109_v29, %v108_v28  ;;  %v2799_v28 = vld [vmem:[%s4949_s1 + $0x468] sm:$0xf]  ;;  %v3069_v29 = vld [vmem:[%s4949_s1 + $0x480] sm:$0xf0] }
  0xca   :  { %v1424_v37 = vadd.f32 %v1423_v36, %v1294_v33  ;;  %v78_v33 = vld [vmem:[%s4948_s0 + $0x210] sm:$0xff]  ;;  %v79_v36 = vld [vmem:[%s4948_s0 + $0x218] sm:$0xff]  ;;  %v2800_v41 = vor.u32 %v3069_v29, %v2799_v28 }
  0xcb   :  { %2054 = vmatpush.bf16.msrb.mxu2 %v164_v31  ;;  %v2625_v31 = vld [vmem:[%s4949_s1 + $0x32c] sm:$0xf0] }
  0xce   :  { %v3744_v25 = vpop.f32.mrf.mxu3 }
  0xd0   :  { %v1552_v47 = vpop.f32.mrf.mxu2  ;;  %v1297_v54 = vpop.f32.mrf.mxu0 }
  0xd1   :  { %v3746_v50 = vadd.f32 %v1552_v47, %v1424_v37  ;;  %v1426_v52 = vpop.f32.mrf.mxu1  ;;  %v149_v37 = vpack.c.bf16 %v79_v36, %v78_v33  ;;  %v69_v47 = vld [vmem:[%s4948_s0 + $0x1c8] sm:$0xff]  ;;  %v2631_v33 = vld [vmem:[%s4949_s1 + $0x318] sm:$0xf]  ;;  %v3027_v36 = vld [vmem:[%s4949_s1 + $0x330] sm:$0xf0] }
  0xd2   :  { %v1427_v59 = vadd.f32 %v1426_v52, %v1297_v54  ;;  %v3062_v52 = vld [vmem:[%s4949_s1 + $0x448] sm:$0xf0] }
  0xd3   :  { %1336 = vmatmul.bf16.gmra.mxu0 %v2540_v48  ;;  %1525 = vmatmul.bf16.gmra.mxu3 %v2880_v49  ;;  %v144_v49 = vpack.c.bf16 %v69_v47, %v68_v16  ;;  %v2772_v8 = vor.u32 %v3062_v52, %v2771_v57  ;;  %v2632_v47 = vor.u32 %v3027_v36, %v2631_v33 }
  0xd4   :  { %1465 = vmatmul.bf16.gmra.mxu1 %v2544_v55  ;;  %1795 = vmatpush.bf16.msrb.mxu0 %v149_v37  ;;  %v2595_v55 = vld [vmem:[%s4949_s1 + $0x2d8] sm:$0xf] }
  0xd5   :  { %1594 = vmatmul.bf16.gmra.mxu2 %v2548_v56  ;;  %v3019_v56 = vld [vmem:[%s4949_s1 + $0x2f0] sm:$0xf0]  ;;  %1663 = vmatpush.bf16.msrb.mxu3 %v144_v49  ;;  %v65_v49 = vld [vmem:[%s4948_s0 + $0x1a8] sm:$0xff] }
  0xd6   :  { %v3754_v61 = vpop.f32.mrf.mxu3 }
  0xd8   :  { %v1555_v63 = vpop.f32.mrf.mxu2  ;;  %v1299_v2 = vpop.f32.mrf.mxu0 }
  0xd9   :  { %v3756_v1 = vadd.f32 %v1555_v63, %v1427_v59  ;;  %v1428_v3 = vpop.f32.mrf.mxu1  ;;  %v2603_v59 = vld [vmem:[%s4949_s1 + $0x2e0] sm:$0xf]  ;;  %v3020_v63 = vld [vmem:[%s4949_s1 + $0x2f8] sm:$0xf0]  ;;  %1664 = vmatpush.bf16.msrb.mxu3 %v143_v15  ;;  %v3030_v15 = vld [vmem:[%s4949_s1 + $0x34c] sm:$0xf] }
  0xda   :  { %v1429_v4 = vadd.f32 %v1428_v3, %v1299_v2  ;;  %v2604_v17 = vor.u32 %v3020_v63, %v2603_v59  ;;  %v76_v59 = vld [vmem:[%s4948_s0 + $0x200] sm:$0xff]  ;;  %v77_v63 = vld [vmem:[%s4948_s0 + $0x208] sm:$0xff] }
  0xde   :  { %v3788_v20 = vpop.f32.mrf.mxu3 }
  0xe0   :  { %v1557_v35 = vpop.f32.mrf.mxu2  ;;  %v1302_v23 = vpop.f32.mrf.mxu0 }
  0xe1   :  { %v3790_v22 = vadd.f32 %v1557_v35, %v1429_v4  ;;  %v1431_v53 = vpop.f32.mrf.mxu1  ;;  %v2596_v4 = vor.u32 %v3019_v56, %v2595_v55 }
  0xe2   :  { %v1432_v0 = vadd.f32 %v1431_v53, %v1302_v23  ;;  %v3026_v53 = vld [vmem:[%s4949_s1 + $0x328] sm:$0xf0] }
  0xe3   :  { %1341 = vmatmul.bf16.gmra.mxu0 %v2568_v21  ;;  %1629 = vmatmul.bf16.vlgmr.msra.gmra.mxu3 %v2744_v44 }
  0xe4   :  { %1470 = vmatmul.bf16.gmra.mxu1 %v2572_v24 }
  0xe5   :  { %1599 = vmatmul.bf16.gmra.mxu2 %v2576_v27  ;;  %v2623_v27 = vld [vmem:[%s4949_s1 + $0x310] sm:$0xf] }
  0xe6   :  { %v3810_v40 = vpop.f32.mrf.mxu3  ;;  %v2624_v39 = vor.u32 %v3026_v53, %v2623_v27  ;;  %v2659_v27 = vld [vmem:[%s4949_s1 + $0x350] sm:$0xf]  ;;  %v3034_v53 = vld [vmem:[%s4949_s1 + $0x368] sm:$0xf0] }
  0xe8   :  { %v1560_v42 = vpop.f32.mrf.mxu2  ;;  %v1304_v46 = vpop.f32.mrf.mxu0 }
  0xe9   :  { %v3812_v45 = vadd.f32 %v1560_v42, %v1432_v0  ;;  %v1433_v48 = vpop.f32.mrf.mxu1  ;;  %v3023_v0 = vld [vmem:[%s4949_s1 + $0x314] sm:$0xf] }
  0xea   :  { %v1434_v54 = vadd.f32 %v1433_v48, %v1304_v46  ;;  %v2628_v16 = vor.u32 %v3023_v0, %v2625_v31  ;;  %v64_v48 = vld [vmem:[%s4948_s0 + $0x1a0] sm:$0xff] }
  0xeb   :  { %v142_v55 = vpack.c.bf16 %v65_v49, %v64_v48 }
  0xed   :  { %1665 = vmatpush.bf16.msrb.mxu3 %v142_v55  ;;  %v61_v55 = vld [vmem:[%s4948_s0 + $0x188] sm:$0xff] }
  0xee   :  { %v3844_v2 = vpop.f32.mrf.mxu3 }
  0xf0   :  { %v1562_v3 = vpop.f32.mrf.mxu2  ;;  %v1307_v6 = vpop.f32.mrf.mxu0 }
  0xf1   :  { %v3846_v5 = vadd.f32 %v1562_v3, %v1434_v54  ;;  %v1436_v26 = vpop.f32.mrf.mxu1 }
  0xf2   :  { %v1437_v11 = vadd.f32 %v1436_v26, %v1307_v6  ;;  %v92_v6 = vld [vmem:[%s4948_s0 + $0x280] sm:$0xff]  ;;  %v2651_v26 = vld [vmem:[%s4949_s1 + $0x348] sm:$0xf] }
  0xf3   :  { %1346 = vmatmul.bf16.gmra.mxu0 %v2596_v4  ;;  %1634 = vmatmul.bf16.gmra.mxu3 %v2772_v8  ;;  %v148_v4 = vpack.c.bf16 %v77_v63, %v76_v59  ;;  %v2679_v59 = vld [vmem:[%s4949_s1 + $0x380] sm:$0xf]  ;;  %v3040_v63 = vld [vmem:[%s4949_s1 + $0x398] sm:$0xf0] }
  0xf4   :  { %1475 = vmatmul.bf16.gmra.mxu1 %v2600_v9  ;;  %v93_v9 = vld [vmem:[%s4948_s0 + $0x288] sm:$0xff] }
  0xf5   :  { %1604 = vmatmul.bf16.gmra.mxu2 %v2604_v17  ;;  %v62_v17 = vld [vmem:[%s4948_s0 + $0x190] sm:$0xff]  ;;  %1796 = vmatpush.bf16.msrb.mxu0 %v148_v4  ;;  %v156_v12 = vpack.c.bf16 %v93_v9, %v92_v6  ;;  %v2855_v4 = vld [vmem:[%s4949_s1 + $0x4d8] sm:$0xf]  ;;  %v2681_v6 = vld [vmem:[%s4949_s1 + $0x39c] sm:$0xf0] }
  0xf6   :  { %v3854_v18 = vpop.f32.mrf.mxu3  ;;  %v2687_v9 = vld [vmem:[%s4949_s1 + $0x388] sm:$0xf] }
  0xf7   :  { %1925 = vmatpush.bf16.msrb.mxu1 %v156_v12  ;;  %v2680_v12 = vor.u32 %v3040_v63, %v2679_v59 }
  0xf8   :  { %v1565_v35 = vpop.f32.mrf.mxu2  ;;  %v1309_v44 = vpop.f32.mrf.mxu0 }
  0xf9   :  { %v3856_v21 = vadd.f32 %v1565_v35, %v1437_v11  ;;  %v1438_v23 = vpop.f32.mrf.mxu1  ;;  %v3033_v11 = vld [vmem:[%s4949_s1 + $0x360] sm:$0xf0]  ;;  %v2827_v35 = vld [vmem:[%s4949_s1 + $0x4a0] sm:$0xf] }
  0xfa   :  { %v1439_v24 = vadd.f32 %v1438_v23, %v1309_v44  ;;  %v3076_v44 = vld [vmem:[%s4949_s1 + $0x4b8] sm:$0xf0]  ;;  %v141_v23 = vpack.c.bf16 %v63_v13, %v62_v17  ;;  %v2652_v29 = vor.u32 %v3033_v11, %v2651_v26  ;;  %v3041_v17 = vld [vmem:[%s4949_s1 + $0x3a0] sm:$0xf0] }
  0xfb   :  { %v2828_v31 = vor.u32 %v3076_v44, %v2827_v35 }
  0xfc   :  { %1666 = vmatpush.bf16.msrb.mxu3 %v141_v23  ;;  %v2688_v23 = vor.u32 %v3041_v17, %v2687_v9 }
  0xfe   :  { %v3882_v37 = vpop.f32.mrf.mxu3 }
 0x100   :  { %v1567_v38 = vpop.f32.mrf.mxu2  ;;  %v1312_v46 = vpop.f32.mrf.mxu0 }
 0x101   :  { %v3884_v42 = vadd.f32 %v1567_v38, %v1439_v24  ;;  %v1441_v54 = vpop.f32.mrf.mxu1  ;;  %v2653_v24 = vld [vmem:[%s4949_s1 + $0x364] sm:$0xf0] }
 0x102   :  { %v1442_v56 = vadd.f32 %v1441_v54, %v1312_v46  ;;  %v2656_v38 = vor.u32 %v3030_v15, %v2653_v24  ;;  %v60_v54 = vld [vmem:[%s4948_s0 + $0x180] sm:$0xff] }
 0x103   :  { %1351 = vmatmul.bf16.gmra.mxu0 %v2624_v39  ;;  %1639 = vmatmul.bf16.gmra.mxu3 %v2800_v41  ;;  %v2660_v39 = vor.u32 %v3034_v53, %v2659_v27 }
 0x104   :  { %1480 = vmatmul.bf16.gmra.mxu1 %v2628_v16 }
 0x105   :  { %1609 = vmatmul.bf16.gmra.mxu2 %v2632_v47 }
 0x106   :  { %v3892_v43 = vpop.f32.mrf.mxu3 }
 0x108   :  { %v1570_v57 = vpop.f32.mrf.mxu2  ;;  %v1314_v58 = vpop.f32.mrf.mxu0 }
 0x109   :  { %v3894_v52 = vadd.f32 %v1570_v57, %v1442_v56  ;;  %v1443_v3 = vpop.f32.mrf.mxu1  ;;  %v140_v57 = vpack.c.bf16 %v61_v55, %v60_v54  ;;  %v2709_v54 = vld [vmem:[%s4949_s1 + $0x3d4] sm:$0xf0]  ;;  %v2715_v55 = vld [vmem:[%s4949_s1 + $0x3c0] sm:$0xf] }
 0x10a   :  { %v1444_v8 = vadd.f32 %v1443_v3, %v1314_v58  ;;  %v3037_v3 = vld [vmem:[%s4949_s1 + $0x384] sm:$0xf] }
 0x10b   :  { %1667 = vmatpush.bf16.msrb.mxu3 %v140_v57  ;;  %v2684_v44 = vor.u32 %v3037_v3, %v2681_v6 }
 0x10e   :  { %v3938_v0 = vpop.f32.mrf.mxu3 }
 0x110   :  { %v1572_v28 = vpop.f32.mrf.mxu2  ;;  %v1317_v36 = vpop.f32.mrf.mxu0 }
 0x111   :  { %v3940_v33 = vadd.f32 %v1572_v28, %v1444_v8  ;;  %v1446_v41 = vpop.f32.mrf.mxu1  ;;  %v3083_v8 = vld [vmem:[%s4949_s1 + $0x4f0] sm:$0xf0] }
 0x112   :  { %v1447_v46 = vadd.f32 %v1446_v41, %v1317_v36  ;;  %v2856_v13 = vor.u32 %v3083_v8, %v2855_v4  ;;  %v3047_v41 = vld [vmem:[%s4949_s1 + $0x3d0] sm:$0xf0] }
 0x113   :  { %1356 = vmatmul.bf16.gmra.mxu0 %v2652_v29  ;;  %1644 = vmatmul.bf16.gmra.mxu3 %v2828_v31 }
 0x114   :  { %1485 = vmatmul.bf16.gmra.mxu1 %v2656_v38 }
 0x115   :  { %1614 = vmatmul.bf16.gmra.mxu2 %v2660_v39  ;;  %v2707_v39 = vld [vmem:[%s4949_s1 + $0x3b8] sm:$0xf] }
 0x116   :  { %v3942_v16 = vpop.f32.mrf.mxu3  ;;  %v2708_v59 = vor.u32 %v3047_v41, %v2707_v39  ;;  %v2927_v39 = vld [vmem:[%s4949_s1 + $0x14] sm:$0xf]  ;;  %v2249_v41 = vld [vmem:[%s4949_s1 + $0x2c] sm:$0xf0] }
 0x118   :  { %v1575_v47 = vpop.f32.mrf.mxu2  ;;  %v1319_v49 = vpop.f32.mrf.mxu0 }
 0x119   :  { %v3944_v48 = vadd.f32 %v1575_v47, %v1447_v46  ;;  %v1448_v56 = vpop.f32.mrf.mxu1  ;;  %v3044_v46 = vld [vmem:[%s4949_s1 + $0x3bc] sm:$0xf]  ;;  %v2883_v47 = vld [vmem:[%s4949_s1 + $0x510] sm:$0xf] }
 0x11a   :  { %v1449_v58 = vadd.f32 %v1448_v56, %v1319_v49  ;;  %v3090_v49 = vld [vmem:[%s4949_s1 + $0x528] sm:$0xf0]  ;;  %v3048_v56 = vld [vmem:[%s4949_s1 + $0x3d8] sm:$0xf0]  ;;  %v2712_v8 = vor.u32 %v3044_v46, %v2709_v54 }
 0x11b   :  { %v2884_v63 = vor.u32 %v3090_v49, %v2883_v47  ;;  %v2716_v6 = vor.u32 %v3048_v56, %v2715_v55 }
 0x11e   :  { %v3976_v26 = vpop.f32.mrf.mxu3 }
 0x120   :  { %v1577_v11 = vpop.f32.mrf.mxu2  ;;  %v1322_v35 = vpop.f32.mrf.mxu0 }
 0x121   :  { %v3978_v15 = vadd.f32 %v1577_v11, %v1449_v58  ;;  %v1451_v24 = vpop.f32.mrf.mxu1 }
 0x122   :  { %v1452_v27 = vadd.f32 %v1451_v24, %v1322_v35  ;;  %v2926_v24 = vld [vmem:[%s4949_s1 + $0xc] sm:$0xf] }
 0x123   :  { %1361 = vmatmul.bf16.gmra.mxu0 %v2680_v12  ;;  %1649 = vmatmul.bf16.gmra.mxu3 %v2856_v13 }
 0x124   :  { %1490 = vmatmul.bf16.gmra.mxu1 %v2684_v44 }
 0x125   :  { %1619 = vmatmul.bf16.gmra.mxu2 %v2688_v23 }
 0x126   :  { %v3980_v53 = vpop.f32.mrf.mxu3 }
 0x128   :  { %v1580_v28 = vpop.f32.mrf.mxu2  ;;  %v1324_v31 = vpop.f32.mrf.mxu0 }
 0x129   :  { %v3982_v29 = vadd.f32 %v1580_v28, %v1452_v27  ;;  %v1453_v36 = vpop.f32.mrf.mxu1  ;;  %v2241_v27 = vld [vmem:[%s4949_s1 + $0x24] sm:$0xf0]  ;;  %v2247_v28 = vld [vmem:[%s4949_s1 + $0x10] sm:$0xf] }
 0x12a   :  { %v1454_v38 = vadd.f32 %v1453_v36, %v1324_v31  ;;  %v2930_v31 = vld [vmem:[%s4949_s1 + $0x28] sm:$0xf0]  ;;  %v2255_v36 = vld [vmem:[%s4949_s1 + $0x18] sm:$0xf]  ;;  %v2244_v49 = vor.u32 %v2926_v24, %v2241_v27  ;;  %v2275_v24 = vld [vmem:[%s4949_s1 + $0x48] sm:$0xf] }
 0x12b   :  { %v2248_v54 = vor.u32 %v2930_v31, %v2247_v28  ;;  %v2937_v27 = vld [vmem:[%s4949_s1 + $0x60] sm:$0xf0]  ;;  %v2283_v28 = vld [vmem:[%s4949_s1 + $0x50] sm:$0xf]  ;;  %v2938_v31 = vld [vmem:[%s4949_s1 + $0x68] sm:$0xf0] }
 0x12e   :  { %v4008_v57 = vpop.f32.mrf.mxu3 }
 0x130   :  { %v1582_v58 = vpop.f32.mrf.mxu2  ;;  %v1327_v4 = vpop.f32.mrf.mxu0 }
 0x131   :  { %v4010_v3 = vadd.f32 %v1582_v58, %v1454_v38  ;;  %v1456_v9 = vpop.f32.mrf.mxu1  ;;  %v2931_v38 = vld [vmem:[%s4949_s1 + $0x30] sm:$0xf0] }
 0x132   :  { %v1457_v17 = vadd.f32 %v1456_v9, %v1327_v4  ;;  %v2256_v58 = vor.u32 %v2931_v38, %v2255_v36  ;;  %v2934_v36 = vld [vmem:[%s4949_s1 + $0x4c] sm:$0xf]  ;;  %v2277_v38 = vld [vmem:[%s4949_s1 + $0x64] sm:$0xf0] }
 0x133   :  { %1366 = vmatmul.bf16.gmra.mxu0 %v2708_v59  ;;  %1654 = vmatmul.bf16.gmra.mxu3 %v2884_v63  ;;  %v2252_v59 = vor.u32 %v2927_v39, %v2249_v41 }
 0x134   :  { %1495 = vmatmul.bf16.gmra.mxu1 %v2712_v8 }
 0x135   :  { %1624 = vmatmul.bf16.gmra.mxu2 %v2716_v6 }
 0x136   :  { %v4012_v11 = vpop.f32.mrf.mxu3 }
 0x138   :  { %v1585_v12 = vpop.f32.mrf.mxu2  ;;  %v1329_v35 = vpop.f32.mrf.mxu0 }
 0x139   :  { %v4014_v13 = vadd.f32 %v1585_v12, %v1457_v17  ;;  %v1458_v44 = vpop.f32.mrf.mxu1 }
 0x13a   :  { %v1459_v23 = vadd.f32 %v1458_v44, %v1329_v35  ;;  %v2933_v44 = vld [vmem:[%s4949_s1 + $0x44] sm:$0xf] }
 0x13b   :  { %4951 = vst [vmem:[#allocation2_spill] sm:$0xff] %v4014_v13 }
 0x13e   :  { %v4040_v46 = vpop.f32.mrf.mxu3 }
 0x140   :  { %v1587_v47 = vpop.f32.mrf.mxu2  ;;  %v1332_v56 = vpop.f32.mrf.mxu0 }
 0x141   :  { %v4042_v55 = vadd.f32 %v1587_v47, %v1459_v23  ;;  %v1461_v63 = vpop.f32.mrf.mxu1  ;;  %v2269_v23 = vld [vmem:[%s4949_s1 + $0x5c] sm:$0xf0] }
 0x142   :  { %v1462_v4 = vadd.f32 %v1461_v63, %v1332_v56  ;;  %v2272_v47 = vor.u32 %v2933_v44, %v2269_v23 }
 0x143   :  { %4952 = vst [vmem:[#allocation3_spill] sm:$0xff] %v4042_v55  ;;  %1668 = vmatmul.bf16.vlgmr.msrb.gmra.mxu3 %v2244_v49  ;;  %1797 = vmatmul.bf16.vlgmr.msrb.gmra.mxu0 %v2248_v54  ;;  %v2276_v49 = vor.u32 %v2937_v27, %v2275_v24  ;;  %v2297_v24 = vld [vmem:[%s4949_s1 + $0x94] sm:$0xf0]  ;;  %v2303_v27 = vld [vmem:[%s4949_s1 + $0x80] sm:$0xf] }
 0x144   :  { %1926 = vmatmul.bf16.vlgmr.msrb.gmra.mxu1 %v2252_v59  ;;  %v2280_v59 = vor.u32 %v2934_v36, %v2277_v38  ;;  %v2941_v36 = vld [vmem:[%s4949_s1 + $0x84] sm:$0xf]  ;;  %v2305_v38 = vld [vmem:[%s4949_s1 + $0x9c] sm:$0xf0] }
 0x145   :  { %2901 = vmatmul.msk.bf16.vlgmr.msrb.gmra.mxu2 %vm1200_vm0, %v2256_v58  ;;  %v2284_v58 = vor.u32 %v2938_v31, %v2283_v28  ;;  %v2944_v28 = vld [vmem:[%s4949_s1 + $0x98] sm:$0xf0]  ;;  %v2945_v31 = vld [vmem:[%s4949_s1 + $0xa0] sm:$0xf0] }
 0x146   :  { %v4045_v8 = vpop.f32.mrf.mxu3 }
 0x148   :  { %v1590_v6 = vpop.f32.mrf.mxu2  ;;  %v1334_v17 = vpop.f32.mrf.mxu0 }
 0x149   :  { %v4047_v9 = vadd.f32 %v1590_v6, %v1462_v4  ;;  %v1463_v12 = vpop.f32.mrf.mxu1 }
 0x14a   :  { %v1464_v35 = vadd.f32 %v1463_v12, %v1334_v17 }
 0x14b   :  { %4953 = vst [vmem:[#allocation4_spill] sm:$0xff] %v4047_v9 }
 0x14e   :  { %v4073_v39 = vpop.f32.mrf.mxu3 }
 0x150   :  { %v1592_v41 = vpop.f32.mrf.mxu2  ;;  %v1337_v56 = vpop.f32.mrf.mxu0 }
 0x151   :  { %v4075_v54 = vadd.f32 %v1592_v41, %v1464_v35  ;;  %v1466_v63 = vpop.f32.mrf.mxu1  ;;  %v2940_v35 = vld [vmem:[%s4949_s1 + $0x7c] sm:$0xf] }
 0x152   :  { %v1467_v4 = vadd.f32 %v1466_v63, %v1337_v56  ;;  %v2304_v56 = vor.u32 %v2944_v28, %v2303_v27  ;;  %v2947_v28 = vld [vmem:[%s4949_s1 + $0xb4] sm:$0xf] }
 0x153   :  { %4954 = vst [vmem:[#allocation5_spill] sm:$0xff] %v4075_v54  ;;  %1673 = vmatmul.bf16.gmra.mxu3 %v2272_v47  ;;  %1802 = vmatmul.bf16.gmra.mxu0 %v2276_v49  ;;  %v2300_v49 = vor.u32 %v2940_v35, %v2297_v24 }
 0x154   :  { %1931 = vmatmul.bf16.gmra.mxu1 %v2280_v59 }
 0x155   :  { %2902 = vmatmul.msk.bf16.gmra.mxu2 %vm1200_vm0, %v2284_v58 }
 0x156   :  { %v4078_v6 = vpop.f32.mrf.mxu3 }
 0x158   :  { %v1595_v17 = vpop.f32.mrf.mxu2  ;;  %v1339_v9 = vpop.f32.mrf.mxu0 }
 0x159   :  { %v4080_v12 = vadd.f32 %v1595_v17, %v1467_v4  ;;  %v1468_v44 = vpop.f32.mrf.mxu1  ;;  %v2308_v4 = vor.u32 %v2941_v36, %v2305_v38  ;;  %v2333_v36 = vld [vmem:[%s4949_s1 + $0xd4] sm:$0xf0] }
 0x15a   :  { %v1469_v23 = vadd.f32 %v1468_v44, %v1339_v9  ;;  %v2311_v9 = vld [vmem:[%s4949_s1 + $0x88] sm:$0xf] }
 0x15b   :  { %4955 = vst [vmem:[#allocation6_spill] sm:$0xff] %v4080_v12  ;;  %v2312_v63 = vor.u32 %v2945_v31, %v2311_v9  ;;  %v1502_v12 = vadd.f32 %v3892_v43, %v3634_v19  ;;  %v2325_v9 = vld [vmem:[%s4949_s1 + $0xcc] sm:$0xf0]  ;;  %v2331_v19 = vld [vmem:[%s4949_s1 + $0xb8] sm:$0xf] }
 0x15c   :  { %v2951_v43 = vld [vmem:[%s4949_s1 + $0xd0] sm:$0xf0]  ;;  %v2948_v31 = vld [vmem:[%s4949_s1 + $0xbc] sm:$0xf] }
 0x15e   :  { %v4106_v41 = vpop.f32.mrf.mxu3 }
 0x160   :  { %v1597_v47 = vpop.f32.mrf.mxu2  ;;  %v1342_v59 = vpop.f32.mrf.mxu0 }
 0x161   :  { %v4108_v58 = vadd.f32 %v1597_v47, %v1469_v23  ;;  %v1471_v17 = vpop.f32.mrf.mxu1 }
 0x162   :  { %v1472_v44 = vadd.f32 %v1471_v17, %v1342_v59  ;;  %v2332_v59 = vor.u32 %v2951_v43, %v2331_v19  ;;  %v2954_v43 = vld [vmem:[%s4949_s1 + $0xec] sm:$0xf] }
 0x163   :  { %1678 = vmatmul.bf16.gmra.mxu3 %v2300_v49  ;;  %1807 = vmatmul.bf16.gmra.mxu0 %v2304_v56  ;;  %v2328_v56 = vor.u32 %v2947_v28, %v2325_v9 }
 0x164   :  { %1936 = vmatmul.bf16.gmra.mxu1 %v2308_v4  ;;  %v2336_v4 = vor.u32 %v2948_v31, %v2333_v36  ;;  %v1509_v31 = vadd.f32 %v3976_v26, %v3694_v10  ;;  %v2959_v36 = vld [vmem:[%s4949_s1 + $0x110] sm:$0xf0] }
 0x165   :  { %2903 = vmatmul.msk.bf16.gmra.mxu2 %vm1200_vm0, %v2312_v63 }
 0x166   :  { %v1630_v54 = vpop.f32.mrf.mxu3 }
 0x167   :  { %v4113_v13 = vadd.f32 %v1630_v54, %v1502_v12  ;;  %v1504_v54 = vadd.f32 %v3938_v0, %v3662_v51  ;;  %v2952_v12 = vld [vmem:[%s4949_s1 + $0xd8] sm:$0xf0] }
 0x168   :  { %v1600_v55 = vpop.f32.mrf.mxu2  ;;  %v1344_v23 = vpop.f32.mrf.mxu0 }
 0x169   :  { %v4115_v35 = vadd.f32 %v1600_v55, %v1472_v44  ;;  %v1473_v24 = vpop.f32.mrf.mxu1  ;;  %v2339_v55 = vld [vmem:[%s4949_s1 + $0xc0] sm:$0xf] }
 0x16a   :  { %v1474_v27 = vadd.f32 %v1473_v24, %v1344_v23  ;;  %v2340_v0 = vor.u32 %v2952_v12, %v2339_v55  ;;  %v1507_v23 = vadd.f32 %v3942_v16, %v3666_v60  ;;  %v2353_v55 = vld [vmem:[%s4949_s1 + $0x104] sm:$0xf0]  ;;  %v2359_v60 = vld [vmem:[%s4949_s1 + $0xf0] sm:$0xf]  ;;  %v2958_v16 = vld [vmem:[%s4949_s1 + $0x108] sm:$0xf0] }
 0x16b   :  { %v2367_v12 = vld [vmem:[%s4949_s1 + $0xf8] sm:$0xf] }
 0x16c   :  { %v2368_v26 = vor.u32 %v2959_v36, %v2367_v12  ;;  %v2381_v12 = vld [vmem:[%s4949_s1 + $0x13c] sm:$0xf0]  ;;  %v2395_v36 = vld [vmem:[%s4949_s1 + $0x130] sm:$0xf] }
 0x16e   :  { %v1632_v38 = vpop.f32.mrf.mxu3 }
 0x16f   :  { %v4143_v49 = vadd.f32 %v1632_v38, %v1504_v54 }
 0x170   :  { %v1602_v47 = vpop.f32.mrf.mxu2  ;;  %v1347_v51 = vpop.f32.mrf.mxu0 }
 0x171   :  { %v4145_v63 = vadd.f32 %v1602_v47, %v1474_v27  ;;  %v1476_v17 = vpop.f32.mrf.mxu1  ;;  %v2955_v47 = vld [vmem:[%s4949_s1 + $0xf4] sm:$0xf] }
 0x172   :  { %v1477_v44 = vadd.f32 %v1476_v17, %v1347_v51  ;;  %v2360_v17 = vor.u32 %v2958_v16, %v2359_v60  ;;  %v2961_v16 = vld [vmem:[%s4949_s1 + $0x124] sm:$0xf] }
 0x173   :  { %1683 = vmatmul.bf16.gmra.mxu3 %v2328_v56  ;;  %1812 = vmatmul.bf16.gmra.mxu0 %v2332_v59  ;;  %v2361_v56 = vld [vmem:[%s4949_s1 + $0x10c] sm:$0xf0] }
 0x174   :  { %1941 = vmatmul.bf16.gmra.mxu1 %v2336_v4  ;;  %v2356_v4 = vor.u32 %v2954_v43, %v2353_v55 }
 0x175   :  { %2904 = vmatmul.msk.bf16.gmra.mxu2 %vm1200_vm0, %v2340_v0 }
 0x176   :  { %v1635_v24 = vpop.f32.mrf.mxu3 }
 0x177   :  { %v4150_v38 = vadd.f32 %v1635_v24, %v1507_v23  ;;  %v2364_v23 = vor.u32 %v2955_v47, %v2361_v56  ;;  %v1514_v47 = vadd.f32 %v4008_v57, %v3744_v25  ;;  %v2966_v56 = vld [vmem:[%s4949_s1 + $0x148] sm:$0xf0] }
 0x178   :  { %v1605_v54 = vpop.f32.mrf.mxu2  ;;  %v1349_v27 = vpop.f32.mrf.mxu0  ;;  %v2396_v57 = vor.u32 %v2966_v56, %v2395_v36  ;;  %v2409_v36 = vld [vmem:[%s4949_s1 + $0x174] sm:$0xf0]  ;;  %v2423_v56 = vld [vmem:[%s4949_s1 + $0x168] sm:$0xf] }
 0x179   :  { %v4152_v28 = vadd.f32 %v1605_v54, %v1477_v44  ;;  %v1478_v9 = vpop.f32.mrf.mxu1 }
 0x17a   :  { %v1479_v19 = vadd.f32 %v1478_v9, %v1349_v27  ;;  %v1512_v27 = vadd.f32 %v3980_v53, %v3716_v30  ;;  %v2387_v30 = vld [vmem:[%s4949_s1 + $0x128] sm:$0xf]  ;;  %v2965_v53 = vld [vmem:[%s4949_s1 + $0x140] sm:$0xf0] }
 0x17e   :  { %v1637_v59 = vpop.f32.mrf.mxu3 }
 0x17f   :  { %v4180_v0 = vadd.f32 %v1637_v59, %v1509_v31 }
 0x180   :  { %v1607_v51 = vpop.f32.mrf.mxu2  ;;  %v1352_v10 = vpop.f32.mrf.mxu0 }
 0x181   :  { %v4182_v44 = vadd.f32 %v1607_v51, %v1479_v19  ;;  %v1481_v24 = vpop.f32.mrf.mxu1  ;;  %v2962_v51 = vld [vmem:[%s4949_s1 + $0x12c] sm:$0xf] }
 0x182   :  { %v1482_v54 = vadd.f32 %v1481_v24, %v1352_v10  ;;  %v2388_v24 = vor.u32 %v2965_v53, %v2387_v30  ;;  %v2968_v53 = vld [vmem:[%s4949_s1 + $0x15c] sm:$0xf] }
 0x183   :  { %1688 = vmatmul.bf16.gmra.mxu3 %v2356_v4  ;;  %1817 = vmatmul.bf16.gmra.mxu0 %v2360_v17  ;;  %v2389_v4 = vld [vmem:[%s4949_s1 + $0x144] sm:$0xf0] }
 0x184   :  { %1946 = vmatmul.bf16.gmra.mxu1 %v2364_v23  ;;  %v2384_v23 = vor.u32 %v2961_v16, %v2381_v12 }
 0x185   :  { %2905 = vmatmul.msk.bf16.gmra.mxu2 %vm1200_vm0, %v2368_v26 }
 0x186   :  { %v1640_v9 = vpop.f32.mrf.mxu3 }
 0x187   :  { %v4187_v59 = vadd.f32 %v1640_v9, %v1512_v27  ;;  %v2392_v27 = vor.u32 %v2962_v51, %v2389_v4  ;;  %v1519_v51 = vadd.f32 %v4040_v46, %v3788_v20  ;;  %v2973_v4 = vld [vmem:[%s4949_s1 + $0x180] sm:$0xf0] }
 0x188   :  { %v1610_v31 = vpop.f32.mrf.mxu2  ;;  %v1354_v19 = vpop.f32.mrf.mxu0  ;;  %v2424_v46 = vor.u32 %v2973_v4, %v2423_v56  ;;  %v2437_v56 = vld [vmem:[%s4949_s1 + $0x1ac] sm:$0xf0]  ;;  %v2451_v4 = vld [vmem:[%s4949_s1 + $0x1a0] sm:$0xf] }
 0x189   :  { %v4189_v43 = vadd.f32 %v1610_v31, %v1482_v54  ;;  %v1483_v55 = vpop.f32.mrf.mxu1 }
 0x18a   :  { %v1484_v60 = vadd.f32 %v1483_v55, %v1354_v19  ;;  %v1517_v19 = vadd.f32 %v4012_v11, %v3754_v61  ;;  %v2415_v61 = vld [vmem:[%s4949_s1 + $0x160] sm:$0xf]  ;;  %v2972_v11 = vld [vmem:[%s4949_s1 + $0x178] sm:$0xf0] }
 0x18e   :  { %v1642_v17 = vpop.f32.mrf.mxu3 }
 0x18f   :  { %v4217_v26 = vadd.f32 %v1642_v17, %v1514_v47 }
 0x190   :  { %v1612_v10 = vpop.f32.mrf.mxu2  ;;  %v1357_v25 = vpop.f32.mrf.mxu0 }
 0x191   :  { %v4219_v54 = vadd.f32 %v1612_v10, %v1484_v60  ;;  %v1486_v9 = vpop.f32.mrf.mxu1  ;;  %v2969_v10 = vld [vmem:[%s4949_s1 + $0x164] sm:$0xf] }
 0x192   :  { %v1487_v31 = vadd.f32 %v1486_v9, %v1357_v25  ;;  %v2416_v9 = vor.u32 %v2972_v11, %v2415_v61  ;;  %v2975_v11 = vld [vmem:[%s4949_s1 + $0x194] sm:$0xf] }
 0x193   :  { %1693 = vmatmul.bf16.gmra.mxu3 %v2384_v23  ;;  %1822 = vmatmul.bf16.gmra.mxu0 %v2388_v24  ;;  %v2417_v23 = vld [vmem:[%s4949_s1 + $0x17c] sm:$0xf0] }
 0x194   :  { %1951 = vmatmul.bf16.gmra.mxu1 %v2392_v27  ;;  %v2412_v27 = vor.u32 %v2968_v53, %v2409_v36 }
 0x195   :  { %2906 = vmatmul.msk.bf16.gmra.mxu2 %vm1200_vm0, %v2396_v57 }
 0x196   :  { %v1645_v55 = vpop.f32.mrf.mxu3 }
 0x197   :  { %v4224_v17 = vadd.f32 %v1645_v55, %v1517_v19  ;;  %v2420_v19 = vor.u32 %v2969_v10, %v2417_v23  ;;  %v1524_v10 = vadd.f32 %v4073_v39, %v3844_v2  ;;  %v2980_v23 = vld [vmem:[%s4949_s1 + $0x1b8] sm:$0xf0] }
 0x198   :  { %v1615_v47 = vpop.f32.mrf.mxu2  ;;  %v1359_v60 = vpop.f32.mrf.mxu0  ;;  %v2452_v39 = vor.u32 %v2980_v23, %v2451_v4  ;;  %v2465_v4 = vld [vmem:[%s4949_s1 + $0x1e4] sm:$0xf0]  ;;  %v2479_v23 = vld [vmem:[%s4949_s1 + $0x1d8] sm:$0xf] }
 0x199   :  { %v4226_v16 = vadd.f32 %v1615_v47, %v1487_v31  ;;  %v1488_v12 = vpop.f32.mrf.mxu1 }
 0x19a   :  { %v1489_v30 = vadd.f32 %v1488_v12, %v1359_v60  ;;  %v1522_v60 = vadd.f32 %v4045_v8, %v3810_v40  ;;  %v2443_v40 = vld [vmem:[%s4949_s1 + $0x198] sm:$0xf]  ;;  %v2979_v8 = vld [vmem:[%s4949_s1 + $0x1b0] sm:$0xf0] }
 0x19e   :  { %v1647_v24 = vpop.f32.mrf.mxu3 }
 0x19f   :  { %v4254_v57 = vadd.f32 %v1647_v24, %v1519_v51 }
 0x1a0   :  { %v1617_v25 = vpop.f32.mrf.mxu2  ;;  %v1362_v20 = vpop.f32.mrf.mxu0 }
 0x1a1   :  { %v4256_v31 = vadd.f32 %v1617_v25, %v1489_v30  ;;  %v1491_v55 = vpop.f32.mrf.mxu1  ;;  %v2976_v25 = vld [vmem:[%s4949_s1 + $0x19c] sm:$0xf] }
 0x1a2   :  { %v1492_v47 = vadd.f32 %v1491_v55, %v1362_v20  ;;  %v2444_v55 = vor.u32 %v2979_v8, %v2443_v40  ;;  %v2982_v8 = vld [vmem:[%s4949_s1 + $0x1cc] sm:$0xf] }
 0x1a3   :  { %1698 = vmatmul.bf16.gmra.mxu3 %v2412_v27  ;;  %1827 = vmatmul.bf16.gmra.mxu0 %v2416_v9  ;;  %v2445_v27 = vld [vmem:[%s4949_s1 + $0x1b4] sm:$0xf0] }
 0x1a4   :  { %1956 = vmatmul.bf16.gmra.mxu1 %v2420_v19  ;;  %v2440_v19 = vor.u32 %v2975_v11, %v2437_v56 }
 0x1a5   :  { %2907 = vmatmul.msk.bf16.gmra.mxu2 %vm1200_vm0, %v2424_v46 }
 0x1a6   :  { %v1650_v12 = vpop.f32.mrf.mxu3 }
 0x1a7   :  { %v4261_v24 = vadd.f32 %v1650_v12, %v1522_v60  ;;  %v2448_v60 = vor.u32 %v2976_v25, %v2445_v27  ;;  %v1529_v25 = vadd.f32 %v4106_v41, %v3882_v37  ;;  %v2987_v27 = vld [vmem:[%s4949_s1 + $0x1f0] sm:$0xf0] }
 0x1a8   :  { %v1620_v51 = vpop.f32.mrf.mxu2  ;;  %v1364_v30 = vpop.f32.mrf.mxu0  ;;  %v2480_v41 = vor.u32 %v2987_v27, %v2479_v23  ;;  %v2994_v27 = vld [vmem:[%s4949_s1 + $0x228] sm:$0xf0] }
 0x1a9   :  { %v4263_v53 = vadd.f32 %v1620_v51, %v1492_v47  ;;  %v1493_v36 = vpop.f32.mrf.mxu1 }
 0x1aa   :  { %v1494_v61 = vadd.f32 %v1493_v36, %v1364_v30  ;;  %v1527_v30 = vadd.f32 %v4078_v6, %v3854_v18  ;;  %v2471_v18 = vld [vmem:[%s4949_s1 + $0x1d0] sm:$0xf]  ;;  %v2986_v6 = vld [vmem:[%s4949_s1 + $0x1e8] sm:$0xf0] }
 0x1ae   :  { %v1652_v9 = vpop.f32.mrf.mxu3 }
 0x1af   :  { %v4291_v46 = vadd.f32 %v1652_v9, %v1524_v10 }
 0x1b0   :  { %v1622_v20 = vpop.f32.mrf.mxu2  ;;  %v1367_v2 = vpop.f32.mrf.mxu0 }
 0x1b1   :  { %v4293_v47 = vadd.f32 %v1622_v20, %v1494_v61  ;;  %v1496_v12 = vpop.f32.mrf.mxu1  ;;  %v2983_v20 = vld [vmem:[%s4949_s1 + $0x1d4] sm:$0xf] }
 0x1b2   :  { %v1497_v51 = vadd.f32 %v1496_v12, %v1367_v2  ;;  %v2472_v12 = vor.u32 %v2986_v6, %v2471_v18  ;;  %v2499_v18 = vld [vmem:[%s4949_s1 + $0x208] sm:$0xf]  ;;  %v2507_v6 = vld [vmem:[%s4949_s1 + $0x210] sm:$0xf] }
 0x1b3   :  { %1703 = vmatmul.bf16.gmra.mxu3 %v2440_v19  ;;  %1832 = vmatmul.bf16.gmra.mxu0 %v2444_v55  ;;  %v2473_v19 = vld [vmem:[%s4949_s1 + $0x1ec] sm:$0xf0] }
 0x1b4   :  { %1961 = vmatmul.bf16.gmra.mxu1 %v2448_v60  ;;  %v2468_v60 = vor.u32 %v2982_v8, %v2465_v4  ;;  %v2493_v4 = vld [vmem:[%s4949_s1 + $0x21c] sm:$0xf0] }
 0x1b5   :  { %2908 = vmatmul.msk.bf16.gmra.mxu2 %vm1200_vm0, %v2452_v39 }
 0x1b6   :  { %v1655_v36 = vpop.f32.mrf.mxu3 }
 0x1b7   :  { %v4298_v9 = vadd.f32 %v1655_v36, %v1527_v30  ;;  %v2476_v30 = vor.u32 %v2983_v20, %v2473_v19  ;;  %v2990_v20 = vld [vmem:[%s4949_s1 + $0x20c] sm:$0xf]  ;;  %v2501_v19 = vld [vmem:[%s4949_s1 + $0x224] sm:$0xf0] }
 0x1b8   :  { %v1625_v10 = vpop.f32.mrf.mxu2  ;;  %v1369_v61 = vpop.f32.mrf.mxu0 }
 0x1b9   :  { %4956 = vst [vmem:[#allocation7_spill] sm:$0xff] %v4298_v9  ;;  %v4300_v11 = vadd.f32 %v1625_v10, %v1497_v51  ;;  %v1498_v56 = vpop.f32.mrf.mxu1 }
 0x1ba   :  { %v1499_v40 = vadd.f32 %v1498_v56, %v1369_v61 }
 0x1be   :  { %v1657_v55 = vpop.f32.mrf.mxu3 }
 0x1bf   :  { %v4328_v39 = vadd.f32 %v1657_v55, %v1529_v25 }
 0x1c0   :  { %v1627_v2 = vpop.f32.mrf.mxu2  ;;  %v1798_v37 = vpop.f32.mrf.mxu0 }
 0x1c1   :  { %4957 = vst [vmem:[#allocation8_spill] sm:$0xff] %v4328_v39  ;;  %v4330_v51 = vadd.f32 %v1627_v2, %v1499_v40  ;;  %v1927_v36 = vpop.f32.mrf.mxu1  ;;  %v2989_v40 = vld [vmem:[%s4949_s1 + $0x204] sm:$0xf] }
 0x1c3   :  { %1708 = vmatmul.bf16.gmra.mxu3 %v2468_v60  ;;  %1837 = vmatmul.bf16.gmra.mxu0 %v2472_v12 }
 0x1c4   :  { %1966 = vmatmul.bf16.gmra.mxu1 %v2476_v30 }
 0x1c5   :  { %2909 = vmatmul.msk.bf16.gmra.mxu2 %vm1200_vm0, %v2480_v41 }
 0x1c6   :  { %v1669_v10 = vpop.f32.mrf.mxu3 }
 0x1c7   :  { %v1670_v61 = vadd.f32 %v1669_v10, %v3636_v7  ;;  %v2993_v7 = vld [vmem:[%s4949_s1 + $0x220] sm:$0xf0]  ;;  %v2504_v10 = vor.u32 %v2990_v20, %v2501_v19 }
 0x1c8   :  { %v2056_v56 = vpop.f32.mrf.mxu2  ;;  %v1800_v9 = vpop.f32.mrf.mxu0  ;;  %v2500_v41 = vor.u32 %v2993_v7, %v2499_v18  ;;  %v3001_v20 = vld [vmem:[%s4949_s1 + $0x260] sm:$0xf0] }
 0x1c9   :  { %v1799_v25 = vadd.f32 %v1798_v37, %v1670_v61  ;;  %v1929_v55 = vpop.f32.mrf.mxu1  ;;  %v2496_v37 = vor.u32 %v2989_v40, %v2493_v4  ;;  %v2997_v19 = vld [vmem:[%s4949_s1 + $0x244] sm:$0xf] }
 0x1cb   :  { %v1928_v8 = vadd.f32 %v1927_v36, %v1799_v25  ;;  %v2508_v36 = vor.u32 %v2994_v27, %v2507_v6  ;;  %v2521_v6 = vld [vmem:[%s4949_s1 + $0x254] sm:$0xf0] }
 0x1cd   :  { %v2057_v23 = vadd.f32 %v2056_v56, %v1928_v8 }
 0x1ce   :  { %v1671_v2 = vpop.f32.mrf.mxu3 }
 0x1cf   :  { %2177 = vst.msk [vmem:[%s4950_s2] sm:$0xff] %vm2176_vm1, %v2057_v23  ;;  %v1672_v60 = vadd.f32 %v1671_v2, %v3664_v34  ;;  %v2527_v23 = vld [vmem:[%s4949_s1 + $0x240] sm:$0xf] }
 0x1d0   :  { %v2058_v12 = vpop.f32.mrf.mxu2  ;;  %v1803_v30 = vpop.f32.mrf.mxu0  ;;  %v2529_v2 = vld [vmem:[%s4949_s1 + $0x25c] sm:$0xf0] }
 0x1d1   :  { %v1801_v61 = vadd.f32 %v1800_v9, %v1672_v60  ;;  %v1932_v56 = vpop.f32.mrf.mxu1 }
 0x1d3   :  { %v1930_v25 = vadd.f32 %v1929_v55, %v1801_v61  ;;  %1713 = vmatmul.bf16.gmra.mxu3 %v2496_v37  ;;  %1842 = vmatmul.bf16.gmra.mxu0 %v2500_v41  ;;  %v2996_v55 = vld [vmem:[%s4949_s1 + $0x23c] sm:$0xf]  ;;  %v2532_v61 = vor.u32 %v2997_v19, %v2529_v2  ;;  %v2557_v2 = vld [vmem:[%s4949_s1 + $0x294] sm:$0xf0] }
 0x1d4   :  { %1971 = vmatmul.bf16.gmra.mxu1 %v2504_v10  ;;  %v2524_v41 = vor.u32 %v2996_v55, %v2521_v6  ;;  %v3004_v19 = vld [vmem:[%s4949_s1 + $0x27c] sm:$0xf] }
 0x1d5   :  { %2910 = vmatmul.msk.bf16.gmra.mxu2 %vm1200_vm0, %v2508_v36  ;;  %v2059_v8 = vadd.f32 %v2058_v12, %v1930_v25 }
 0x1d6   :  { %v1674_v39 = vpop.f32.mrf.mxu3 }
 0x1d7   :  { %2178 = vst.msk [vmem:[%s4950_s2 + $0x8] sm:$0xff] %vm2176_vm1, %v2059_v8  ;;  %v1675_v34 = vadd.f32 %v1674_v39, %v3668_v62  ;;  %v3000_v62 = vld [vmem:[%s4949_s1 + $0x258] sm:$0xf0]  ;;  %v2535_v39 = vld [vmem:[%s4949_s1 + $0x248] sm:$0xf] }
 0x1d8   :  { %v2061_v40 = vpop.f32.mrf.mxu2  ;;  %v1805_v4 = vpop.f32.mrf.mxu0  ;;  %v2536_v10 = vor.u32 %v3001_v20, %v2535_v39  ;;  %v2563_v39 = vld [vmem:[%s4949_s1 + $0x280] sm:$0xf]  ;;  %v3008_v20 = vld [vmem:[%s4949_s1 + $0x298] sm:$0xf0] }
 0x1d9   :  { %v1804_v18 = vadd.f32 %v1803_v30, %v1675_v34  ;;  %v1934_v9 = vpop.f32.mrf.mxu1  ;;  %v2528_v30 = vor.u32 %v3000_v62, %v2527_v23  ;;  %v2549_v23 = vld [vmem:[%s4949_s1 + $0x28c] sm:$0xf0]  ;;  %v2555_v62 = vld [vmem:[%s4949_s1 + $0x278] sm:$0xf] }
 0x1db   :  { %v1933_v7 = vadd.f32 %v1932_v56, %v1804_v18 }
 0x1dd   :  { %v2062_v27 = vadd.f32 %v2061_v40, %v1933_v7 }
 0x1de   :  { %v1676_v60 = vpop.f32.mrf.mxu3 }
 0x1df   :  { %2179 = vst.msk [vmem:[%s4950_s2 + $0x10] sm:$0xff] %vm2176_vm1, %v2062_v27  ;;  %v1677_v12 = vadd.f32 %v1676_v60, %v3696_v14 }
 0x1e0   :  { %v2063_v37 = vpop.f32.mrf.mxu2  ;;  %v1808_v36 = vpop.f32.mrf.mxu0 }
 0x1e1   :  { %v1806_v56 = vadd.f32 %v1805_v4, %v1677_v12  ;;  %v1937_v25 = vpop.f32.mrf.mxu1 }
 0x1e3   :  { %v1935_v8 = vadd.f32 %v1934_v9, %v1806_v56  ;;  %1718 = vmatmul.bf16.gmra.mxu3 %v2524_v41  ;;  %1847 = vmatmul.bf16.gmra.mxu0 %v2528_v30  ;;  %v3003_v9 = vld [vmem:[%s4949_s1 + $0x274] sm:$0xf] }
 0x1e4   :  { %1976 = vmatmul.bf16.gmra.mxu1 %v2532_v61  ;;  %v2552_v41 = vor.u32 %v3003_v9, %v2549_v23  ;;  %v2560_v61 = vor.u32 %v3004_v19, %v2557_v2  ;;  %v2577_v9 = vld [vmem:[%s4949_s1 + $0x2c4] sm:$0xf0]  ;;  %v2583_v23 = vld [vmem:[%s4949_s1 + $0x2b0] sm:$0xf] }
 0x1e5   :  { %2911 = vmatmul.msk.bf16.gmra.mxu2 %vm1200_vm0, %v2536_v10  ;;  %v2064_v34 = vadd.f32 %v2063_v37, %v1935_v8  ;;  %v2564_v10 = vor.u32 %v3008_v20, %v2563_v39  ;;  %v3015_v39 = vld [vmem:[%s4949_s1 + $0x2d0] sm:$0xf0]  ;;  %v2585_v20 = vld [vmem:[%s4949_s1 + $0x2cc] sm:$0xf0] }
 0x1e6   :  { %v1679_v40 = vpop.f32.mrf.mxu3 }
 0x1e7   :  { %2180 = vst.msk [vmem:[%s4950_s2 + $0x18] sm:$0xff] %vm2176_vm1, %v2064_v34  ;;  %v1680_v14 = vadd.f32 %v1679_v40, %v3718_v32  ;;  %v3007_v32 = vld [vmem:[%s4949_s1 + $0x290] sm:$0xf0] }
 0x1e8   :  { %v2066_v18 = vpop.f32.mrf.mxu2  ;;  %v1810_v7 = vpop.f32.mrf.mxu0  ;;  %v2556_v30 = vor.u32 %v3007_v32, %v2555_v62  ;;  %v2591_v62 = vld [vmem:[%s4949_s1 + $0x2b8] sm:$0xf] }
 0x1e9   :  { %v1809_v55 = vadd.f32 %v1808_v36, %v1680_v14  ;;  %v1939_v4 = vpop.f32.mrf.mxu1 }
 0x1eb   :  { %v1938_v6 = vadd.f32 %v1937_v25, %v1809_v55 }
 0x1ed   :  { %v2067_v27 = vadd.f32 %v2066_v18, %v1938_v6 }
 0x1ee   :  { %v1681_v60 = vpop.f32.mrf.mxu3 }
 0x1ef   :  { %2181 = vst.msk [vmem:[%s4950_s2 + $0x20] sm:$0xff] %vm2176_vm1, %v2067_v27  ;;  %v1682_v12 = vadd.f32 %v1681_v60, %v3746_v50  ;;  %v3011_v27 = vld [vmem:[%s4949_s1 + $0x2b4] sm:$0xf] }
 0x1f0   :  { %v2068_v37 = vpop.f32.mrf.mxu2  ;;  %v1813_v36 = vpop.f32.mrf.mxu0 }
 0x1f1   :  { %v1811_v56 = vadd.f32 %v1810_v7, %v1682_v12  ;;  %v1942_v25 = vpop.f32.mrf.mxu1 }
 0x1f3   :  { %v1940_v8 = vadd.f32 %v1939_v4, %v1811_v56  ;;  %1723 = vmatmul.bf16.gmra.mxu3 %v2552_v41  ;;  %1852 = vmatmul.bf16.gmra.mxu0 %v2556_v30  ;;  %v3010_v4 = vld [vmem:[%s4949_s1 + $0x2ac] sm:$0xf]  ;;  %v2592_v30 = vor.u32 %v3015_v39, %v2591_v62  ;;  %v2613_v62 = vld [vmem:[%s4949_s1 + $0x304] sm:$0xf0] }
 0x1f4   :  { %1981 = vmatmul.bf16.gmra.mxu1 %v2560_v61  ;;  %v2580_v12 = vor.u32 %v3010_v4, %v2577_v9  ;;  %v2619_v4 = vld [vmem:[%s4949_s1 + $0x2f0] sm:$0xf] }
 0x1f5   :  { %2912 = vmatmul.msk.bf16.gmra.mxu2 %vm1200_vm0, %v2564_v10  ;;  %v2069_v34 = vadd.f32 %v2068_v37, %v1940_v8 }
 0x1f6   :  { %v1684_v40 = vpop.f32.mrf.mxu3 }
 0x1f7   :  { %2182 = vst.msk [vmem:[%s4950_s2 + $0x28] sm:$0xff] %vm2176_vm1, %v2069_v34  ;;  %v1685_v50 = vadd.f32 %v1684_v40, %v3756_v1  ;;  %v3014_v1 = vld [vmem:[%s4949_s1 + $0x2c8] sm:$0xf0] }
 0x1f8   :  { %v2071_v14 = vpop.f32.mrf.mxu2  ;;  %v1815_v18 = vpop.f32.mrf.mxu0  ;;  %v2584_v37 = vor.u32 %v3014_v1, %v2583_v23  ;;  %v3022_v23 = vld [vmem:[%s4949_s1 + $0x308] sm:$0xf0] }
 0x1f9   :  { %v1814_v55 = vadd.f32 %v1813_v36, %v1685_v50  ;;  %v1944_v7 = vpop.f32.mrf.mxu1  ;;  %v2588_v36 = vor.u32 %v3011_v27, %v2585_v20  ;;  %v3018_v1 = vld [vmem:[%s4949_s1 + $0x2ec] sm:$0xf] }
 0x1fb   :  { %v1943_v6 = vadd.f32 %v1942_v25, %v1814_v55  ;;  %v3017_v55 = vld [vmem:[%s4949_s1 + $0x2e4] sm:$0xf] }
 0x1fd   :  { %v2072_v32 = vadd.f32 %v2071_v14, %v1943_v6  ;;  %v2611_v6 = vld [vmem:[%s4949_s1 + $0x2e8] sm:$0xf] }
 0x1fe   :  { %v1686_v19 = vpop.f32.mrf.mxu3 }
 0x1ff   :  { %2183 = vst.msk [vmem:[%s4950_s2 + $0x30] sm:$0xff] %vm2176_vm1, %v2072_v32  ;;  %v1687_v2 = vadd.f32 %v1686_v19, %v3790_v22 }
 0x200   :  { %v2073_v60 = vpop.f32.mrf.mxu2  ;;  %v1818_v41 = vpop.f32.mrf.mxu0 }
 0x201   :  { %v1816_v10 = vadd.f32 %v1815_v18, %v1687_v2  ;;  %v1947_v61 = vpop.f32.mrf.mxu1 }
 0x203   :  { %v1945_v56 = vadd.f32 %v1944_v7, %v1816_v10  ;;  %1728 = vmatmul.bf16.gmra.mxu3 %v2580_v12  ;;  %1857 = vmatmul.bf16.gmra.mxu0 %v2584_v37  ;;  %v2605_v7 = vld [vmem:[%s4949_s1 + $0x2fc] sm:$0xf0]  ;;  %v2616_v12 = vor.u32 %v3018_v1, %v2613_v62 }
 0x204   :  { %1986 = vmatmul.bf16.gmra.mxu1 %v2588_v36  ;;  %v2608_v20 = vor.u32 %v3017_v55, %v2605_v7  ;;  %v3029_v55 = vld [vmem:[%s4949_s1 + $0x340] sm:$0xf0] }
 0x205   :  { %2913 = vmatmul.msk.bf16.gmra.mxu2 %vm1200_vm0, %v2592_v30  ;;  %v2074_v25 = vadd.f32 %v2073_v60, %v1945_v56  ;;  %v2620_v60 = vor.u32 %v3022_v23, %v2619_v4  ;;  %v3025_v7 = vld [vmem:[%s4949_s1 + $0x324] sm:$0xf] }
 0x206   :  { %v1689_v8 = vpop.f32.mrf.mxu3 }
 0x207   :  { %2184 = vst.msk [vmem:[%s4950_s2 + $0x38] sm:$0xff] %vm2176_vm1, %v2074_v25  ;;  %v1690_v22 = vadd.f32 %v1689_v8, %v3812_v45  ;;  %v3021_v45 = vld [vmem:[%s4949_s1 + $0x300] sm:$0xf0] }
 0x208   :  { %v2076_v34 = vpop.f32.mrf.mxu2  ;;  %v1820_v40 = vpop.f32.mrf.mxu0  ;;  %v2612_v19 = vor.u32 %v3021_v45, %v2611_v6  ;;  %v2641_v6 = vld [vmem:[%s4949_s1 + $0x33c] sm:$0xf0] }
 0x209   :  { %v1819_v50 = vadd.f32 %v1818_v41, %v1690_v22  ;;  %v1949_v14 = vpop.f32.mrf.mxu1 }
 0x20b   :  { %v1948_v18 = vadd.f32 %v1947_v61, %v1819_v50  ;;  %v2639_v50 = vld [vmem:[%s4949_s1 + $0x320] sm:$0xf] }
 0x20d   :  { %v2077_v9 = vadd.f32 %v2076_v34, %v1948_v18  ;;  %v3024_v34 = vld [vmem:[%s4949_s1 + $0x31c] sm:$0xf] }
 0x20e   :  { %v1691_v32 = vpop.f32.mrf.mxu3 }
 0x20f   :  { %2185 = vst.msk [vmem:[%s4950_s2 + $0x40] sm:$0xff] %vm2176_vm1, %v2077_v9  ;;  %v1692_v39 = vadd.f32 %v1691_v32, %v3846_v5 }
 0x210   :  { %v2078_v27 = vpop.f32.mrf.mxu2  ;;  %v1823_v2 = vpop.f32.mrf.mxu0 }
 0x211   :  { %v1821_v37 = vadd.f32 %v1820_v40, %v1692_v39  ;;  %v1952_v41 = vpop.f32.mrf.mxu1  ;;  %v2633_v40 = vld [vmem:[%s4949_s1 + $0x334] sm:$0xf0]  ;;  %v2644_v39 = vor.u32 %v3025_v7, %v2641_v6 }
 0x212   :  { %v2636_v23 = vor.u32 %v3024_v34, %v2633_v40  ;;  %v2669_v34 = vld [vmem:[%s4949_s1 + $0x374] sm:$0xf0] }
 0x213   :  { %v1950_v30 = vadd.f32 %v1949_v14, %v1821_v37  ;;  %1733 = vmatmul.bf16.gmra.mxu3 %v2608_v20  ;;  %1862 = vmatmul.bf16.gmra.mxu0 %v2612_v19  ;;  %v2647_v14 = vld [vmem:[%s4949_s1 + $0x328] sm:$0xf] }
 0x214   :  { %1991 = vmatmul.bf16.gmra.mxu1 %v2616_v12  ;;  %v2648_v32 = vor.u32 %v3029_v55, %v2647_v14 }
 0x215   :  { %2914 = vmatmul.msk.bf16.gmra.mxu2 %vm1200_vm0, %v2620_v60  ;;  %v2079_v36 = vadd.f32 %v2078_v27, %v1950_v30 }
 0x216   :  { %v1694_v10 = vpop.f32.mrf.mxu3 }
 0x217   :  { %2186 = vst.msk [vmem:[%s4950_s2 + $0x48] sm:$0xff] %vm2176_vm1, %v2079_v36  ;;  %v1695_v5 = vadd.f32 %v1694_v10, %v3856_v21  ;;  %v3028_v21 = vld [vmem:[%s4949_s1 + $0x338] sm:$0xf0]  ;;  %v3031_v10 = vld [vmem:[%s4949_s1 + $0x354] sm:$0xf] }
 0x218   :  { %v2081_v61 = vpop.f32.mrf.mxu2  ;;  %v1825_v56 = vpop.f32.mrf.mxu0  ;;  %v2640_v1 = vor.u32 %v3028_v21, %v2639_v50 }
 0x219   :  { %v1824_v25 = vadd.f32 %v1823_v2, %v1695_v5  ;;  %v1954_v8 = vpop.f32.mrf.mxu1  ;;  %v2661_v5 = vld [vmem:[%s4949_s1 + $0x36c] sm:$0xf0] }
 0x21a   :  { %v2664_v14 = vor.u32 %v3031_v10, %v2661_v5 }
 0x21b   :  { %v1953_v22 = vadd.f32 %v1952_v41, %v1824_v25 }
 0x21d   :  { %v2082_v18 = vadd.f32 %v2081_v61, %v1953_v22  ;;  %v2667_v61 = vld [vmem:[%s4949_s1 + $0x358] sm:$0xf]  ;;  %v3032_v22 = vld [vmem:[%s4949_s1 + $0x35c] sm:$0xf] }
 0x21e   :  { %v1696_v45 = vpop.f32.mrf.mxu3  ;;  %v2672_v6 = vor.u32 %v3032_v22, %v2669_v34 }
 0x21f   :  { %2187 = vst.msk [vmem:[%s4950_s2 + $0x50] sm:$0xff] %vm2176_vm1, %v2082_v18  ;;  %v1697_v4 = vadd.f32 %v1696_v45, %v3884_v42 }
 0x220   :  { %v2083_v9 = vpop.f32.mrf.mxu2  ;;  %v1828_v62 = vpop.f32.mrf.mxu0 }
 0x221   :  { %v1826_v27 = vadd.f32 %v1825_v56, %v1697_v4  ;;  %v1957_v20 = vpop.f32.mrf.mxu1  ;;  %v2675_v56 = vld [vmem:[%s4949_s1 + $0x360] sm:$0xf] }
 0x223   :  { %v1955_v19 = vadd.f32 %v1954_v8, %v1826_v27  ;;  %1738 = vmatmul.bf16.gmra.mxu3 %v2636_v23  ;;  %1867 = vmatmul.bf16.gmra.mxu0 %v2640_v1  ;;  %v3036_v8 = vld [vmem:[%s4949_s1 + $0x378] sm:$0xf0] }
 0x224   :  { %1996 = vmatmul.bf16.gmra.mxu1 %v2644_v39  ;;  %v2676_v7 = vor.u32 %v3036_v8, %v2675_v56 }
 0x225   :  { %2915 = vmatmul.msk.bf16.gmra.mxu2 %vm1200_vm0, %v2648_v32  ;;  %v2084_v2 = vadd.f32 %v2083_v9, %v1955_v19  ;;  %v3038_v19 = vld [vmem:[%s4949_s1 + $0x38c] sm:$0xf] }
 0x226   :  { %v1699_v60 = vpop.f32.mrf.mxu3 }
 0x227   :  { %2188 = vst.msk [vmem:[%s4950_s2 + $0x58] sm:$0xff] %vm2176_vm1, %v2084_v2  ;;  %v1700_v42 = vadd.f32 %v1699_v60, %v3894_v52  ;;  %v3035_v52 = vld [vmem:[%s4949_s1 + $0x370] sm:$0xf0]  ;;  %v2689_v2 = vld [vmem:[%s4949_s1 + $0x3a4] sm:$0xf0] }
 0x228   :  { %v2086_v12 = vpop.f32.mrf.mxu2  ;;  %v1830_v37 = vpop.f32.mrf.mxu0  ;;  %v2668_v18 = vor.u32 %v3035_v52, %v2667_v61  ;;  %v2695_v60 = vld [vmem:[%s4949_s1 + $0x390] sm:$0xf]  ;;  %v2692_v61 = vor.u32 %v3038_v19, %v2689_v2 }
 0x229   :  { %v1829_v41 = vadd.f32 %v1828_v62, %v1700_v42  ;;  %v1959_v30 = vpop.f32.mrf.mxu1  ;;  %v2703_v42 = vld [vmem:[%s4949_s1 + $0x398] sm:$0xf] }
 0x22b   :  { %v1958_v36 = vadd.f32 %v1957_v20, %v1829_v41  ;;  %v3039_v41 = vld [vmem:[%s4949_s1 + $0x394] sm:$0xf] }
 0x22d   :  { %v2087_v25 = vadd.f32 %v2086_v12, %v1958_v36 }
 0x22e   :  { %v1701_v40 = vpop.f32.mrf.mxu3 }
 0x22f   :  { %2189 = vst.msk [vmem:[%s4950_s2 + $0x60] sm:$0xff] %vm2176_vm1, %v2087_v25  ;;  %v1702_v50 = vadd.f32 %v1701_v40, %v3940_v33 }
 0x230   :  { %v2088_v21 = vpop.f32.mrf.mxu2  ;;  %v1833_v55 = vpop.f32.mrf.mxu0 }
 0x231   :  { %v1831_v45 = vadd.f32 %v1830_v37, %v1702_v50  ;;  %v1962_v4 = vpop.f32.mrf.mxu1  ;;  %v3043_v37 = vld [vmem:[%s4949_s1 + $0x3b0] sm:$0xf0] }
 0x232   :  { %v2704_v25 = vor.u32 %v3043_v37, %v2703_v42 }
 0x233   :  { %v1960_v9 = vadd.f32 %v1959_v30, %v1831_v45  ;;  %1743 = vmatmul.bf16.gmra.mxu3 %v2664_v14  ;;  %1872 = vmatmul.bf16.gmra.mxu0 %v2668_v18  ;;  %v2697_v30 = vld [vmem:[%s4949_s1 + $0x3ac] sm:$0xf0]  ;;  %v3045_v45 = vld [vmem:[%s4949_s1 + $0x3c4] sm:$0xf] }
 0x234   :  { %2001 = vmatmul.bf16.gmra.mxu1 %v2672_v6  ;;  %v2700_v8 = vor.u32 %v3039_v41, %v2697_v30 }
 0x235   :  { %2916 = vmatmul.msk.bf16.gmra.mxu2 %vm1200_vm0, %v2676_v7  ;;  %v2089_v23 = vadd.f32 %v2088_v21, %v1960_v9  ;;  %v2723_v9 = vld [vmem:[%s4949_s1 + $0x3c8] sm:$0xf] }
 0x236   :  { %v1704_v1 = vpop.f32.mrf.mxu3 }
 0x237   :  { %2190 = vst.msk [vmem:[%s4950_s2 + $0x68] sm:$0xff] %vm2176_vm1, %v2089_v23  ;;  %v1705_v33 = vadd.f32 %v1704_v1, %v3944_v48  ;;  %v3042_v48 = vld [vmem:[%s4949_s1 + $0x3a8] sm:$0xf0]  ;;  %v2731_v23 = vld [vmem:[%s4949_s1 + $0x3d0] sm:$0xf] }
 0x238   :  { %v2091_v62 = vpop.f32.mrf.mxu2  ;;  %v1835_v32 = vpop.f32.mrf.mxu0  ;;  %v2696_v52 = vor.u32 %v3042_v48, %v2695_v60 }
 0x239   :  { %v1834_v39 = vadd.f32 %v1833_v55, %v1705_v33  ;;  %v1964_v27 = vpop.f32.mrf.mxu1  ;;  %v3050_v33 = vld [vmem:[%s4949_s1 + $0x3e8] sm:$0xf0] }
 0x23a   :  { %v2732_v48 = vor.u32 %v3050_v33, %v2731_v23 }
 0x23b   :  { %v1963_v20 = vadd.f32 %v1962_v4, %v1834_v39  ;;  %v2717_v4 = vld [vmem:[%s4949_s1 + $0x3dc] sm:$0xf0] }
 0x23c   :  { %v2720_v19 = vor.u32 %v3045_v45, %v2717_v4 }
 0x23d   :  { %v2092_v12 = vadd.f32 %v2091_v62, %v1963_v20  ;;  %v3046_v62 = vld [vmem:[%s4949_s1 + $0x3cc] sm:$0xf] }
 0x23e   :  { %v1706_v36 = vpop.f32.mrf.mxu3 }
 0x23f   :  { %2191 = vst.msk [vmem:[%s4950_s2 + $0x70] sm:$0xff] %vm2176_vm1, %v2092_v12  ;;  %v1707_v10 = vadd.f32 %v1706_v36, %v3978_v15 }
 0x240   :  { %v2093_v5 = vpop.f32.mrf.mxu2  ;;  %v1838_v56 = vpop.f32.mrf.mxu0 }
 0x241   :  { %v1836_v22 = vadd.f32 %v1835_v32, %v1707_v10  ;;  %v1967_v34 = vpop.f32.mrf.mxu1  ;;  %v2725_v32 = vld [vmem:[%s4949_s1 + $0x3e4] sm:$0xf0] }
 0x242   :  { %v2728_v42 = vor.u32 %v3046_v62, %v2725_v32 }
 0x243   :  { %v1965_v40 = vadd.f32 %v1964_v27, %v1836_v22  ;;  %1748 = vmatmul.bf16.gmra.mxu3 %v2692_v61  ;;  %1877 = vmatmul.bf16.gmra.mxu0 %v2696_v52  ;;  %v2745_v22 = vld [vmem:[%s4949_s1 + $0x414] sm:$0xf0] }
 0x244   :  { %2006 = vmatmul.bf16.gmra.mxu1 %v2700_v8  ;;  %v3052_v8 = vld [vmem:[%s4949_s1 + $0x3fc] sm:$0xf] }
 0x245   :  { %2917 = vmatmul.msk.bf16.gmra.mxu2 %vm1200_vm0, %v2704_v25  ;;  %v2094_v50 = vadd.f32 %v2093_v5, %v1965_v40  ;;  %v3056_v40 = vld [vmem:[%s4949_s1 + $0x418] sm:$0xf0]  ;;  %v2748_v4 = vor.u32 %v3052_v8, %v2745_v22 }
 0x246   :  { %v1709_v21 = vpop.f32.mrf.mxu3 }
 0x247   :  { %2192 = vst.msk [vmem:[%s4950_s2 + $0x78] sm:$0xff] %vm2176_vm1, %v2094_v50  ;;  %v1710_v15 = vadd.f32 %v1709_v21, %v3982_v29  ;;  %v3049_v29 = vld [vmem:[%s4949_s1 + $0x3e0] sm:$0xf0]  ;;  %v2759_v50 = vld [vmem:[%s4949_s1 + $0x408] sm:$0xf] }
 0x248   :  { %v2096_v14 = vpop.f32.mrf.mxu2  ;;  %v1840_v18 = vpop.f32.mrf.mxu0  ;;  %v2724_v2 = vor.u32 %v3049_v29, %v2723_v9 }
 0x249   :  { %v1839_v55 = vadd.f32 %v1838_v56, %v1710_v15  ;;  %v1969_v7 = vpop.f32.mrf.mxu1  ;;  %v3057_v15 = vld [vmem:[%s4949_s1 + $0x420] sm:$0xf0] }
 0x24a   :  { %v2760_v23 = vor.u32 %v3057_v15, %v2759_v50 }
 0x24b   :  { %v1968_v6 = vadd.f32 %v1967_v34, %v1839_v55  ;;  %v2751_v34 = vld [vmem:[%s4949_s1 + $0x400] sm:$0xf] }
 0x24c   :  { %v2752_v9 = vor.u32 %v3056_v40, %v2751_v34 }
 0x24d   :  { %v2097_v1 = vadd.f32 %v2096_v14, %v1968_v6  ;;  %v3053_v14 = vld [vmem:[%s4949_s1 + $0x404] sm:$0xf] }
 0x24e   :  { %v1711_v39 = vpop.f32.mrf.mxu3 }
 0x24f   :  { %2193 = vst.msk [vmem:[%s4950_s2 + $0x80] sm:$0xff] %vm2176_vm1, %v2097_v1  ;;  %v1712_v27 = vadd.f32 %v1711_v39, %v4010_v3  ;;  %v4958_v3 = vld [vmem:[#allocation2_spill] sm:$0xff] }
 0x250   :  { %v2098_v20 = vpop.f32.mrf.mxu2  ;;  %v1843_v60 = vpop.f32.mrf.mxu0 }
 0x251   :  { %v1841_v12 = vadd.f32 %v1840_v18, %v1712_v27  ;;  %v1972_v37 = vpop.f32.mrf.mxu1  ;;  %v2753_v18 = vld [vmem:[%s4949_s1 + $0x41c] sm:$0xf0] }
 0x252   :  { %v2756_v1 = vor.u32 %v3053_v14, %v2753_v18 }
 0x253   :  { %v1970_v41 = vadd.f32 %v1969_v7, %v1841_v12  ;;  %1753 = vmatmul.bf16.gmra.mxu3 %v2720_v19  ;;  %1882 = vmatmul.bf16.gmra.mxu0 %v2724_v2  ;;  %v4959_v7 = vld [vmem:[#allocation3_spill] sm:$0xff] }
 0x254   :  { %2011 = vmatmul.bf16.gmra.mxu1 %v2728_v42 }
 0x255   :  { %2918 = vmatmul.msk.bf16.gmra.mxu2 %vm1200_vm0, %v2732_v48  ;;  %v2099_v30 = vadd.f32 %v2098_v20, %v1970_v41  ;;  %v4960_v20 = vld [vmem:[#allocation4_spill] sm:$0xff] }
 0x256   :  { %v1714_v36 = vpop.f32.mrf.mxu3  ;;  %v2773_v41 = vld [vmem:[%s4949_s1 + $0x44c] sm:$0xf0] }
 0x257   :  { %2194 = vst.msk [vmem:[%s4950_s2 + $0x88] sm:$0xff] %vm2176_vm1, %v2099_v30  ;;  %v1715_v10 = vadd.f32 %v1714_v36, %v4958_v3  ;;  %v2779_v30 = vld [vmem:[%s4949_s1 + $0x438] sm:$0xf]  ;;  %v3063_v36 = vld [vmem:[%s4949_s1 + $0x450] sm:$0xf0] }
 0x258   :  { %v2101_v5 = vpop.f32.mrf.mxu2  ;;  %v1845_v61 = vpop.f32.mrf.mxu0  ;;  %v2787_v3 = vld [vmem:[%s4949_s1 + $0x440] sm:$0xf]  ;;  %v2780_v40 = vor.u32 %v3063_v36, %v2779_v30 }
 0x259   :  { %v1844_v52 = vadd.f32 %v1843_v60, %v1715_v10  ;;  %v1974_v56 = vpop.f32.mrf.mxu1 }
 0x25b   :  { %v1973_v25 = vadd.f32 %v1972_v37, %v1844_v52  ;;  %v3059_v37 = vld [vmem:[%s4949_s1 + $0x434] sm:$0xf]  ;;  %v2781_v52 = vld [vmem:[%s4949_s1 + $0x454] sm:$0xf0] }
 0x25c   :  { %v2776_v34 = vor.u32 %v3059_v37, %v2773_v41 }
 0x25d   :  { %v2102_v21 = vadd.f32 %v2101_v5, %v1973_v25  ;;  %v3064_v5 = vld [vmem:[%s4949_s1 + $0x458] sm:$0xf0] }
 0x25e   :  { %v1716_v55 = vpop.f32.mrf.mxu3  ;;  %v4961_v25 = vld [vmem:[#allocation5_spill] sm:$0xff] }
 0x25f   :  { %2195 = vst.msk [vmem:[%s4950_s2 + $0x90] sm:$0xff] %vm2176_vm1, %v2102_v21  ;;  %v1717_v6 = vadd.f32 %v1716_v55, %v4959_v7  ;;  %v2788_v21 = vor.u32 %v3064_v5, %v2787_v3 }
 0x260   :  { %v2103_v45 = vpop.f32.mrf.mxu2  ;;  %v1848_v29 = vpop.f32.mrf.mxu0 }
 0x261   :  { %v1846_v33 = vadd.f32 %v1845_v61, %v1717_v6  ;;  %v1977_v62 = vpop.f32.mrf.mxu1  ;;  %v3060_v61 = vld [vmem:[%s4949_s1 + $0x43c] sm:$0xf] }
 0x262   :  { %v2784_v15 = vor.u32 %v3060_v61, %v2781_v52 }
 0x263   :  { %v1975_v32 = vadd.f32 %v1974_v56, %v1846_v33  ;;  %1758 = vmatmul.bf16.gmra.mxu3 %v2748_v4  ;;  %1887 = vmatmul.bf16.gmra.mxu0 %v2752_v9 }
 0x264   :  { %2016 = vmatmul.bf16.gmra.mxu1 %v2756_v1 }
 0x265   :  { %2919 = vmatmul.msk.bf16.gmra.mxu2 %vm1200_vm0, %v2760_v23  ;;  %v2104_v39 = vadd.f32 %v2103_v45, %v1975_v32  ;;  %v4962_v45 = vld [vmem:[#allocation6_spill] sm:$0xff]  ;;  %v2801_v32 = vld [vmem:[%s4949_s1 + $0x484] sm:$0xf0] }
 0x266   :  { %v1719_v27 = vpop.f32.mrf.mxu3 }
 0x267   :  { %2196 = vst.msk [vmem:[%s4950_s2 + $0x98] sm:$0xff] %vm2176_vm1, %v2104_v39  ;;  %v1720_v19 = vadd.f32 %v1719_v27, %v4960_v20  ;;  %v2807_v39 = vld [vmem:[%s4949_s1 + $0x470] sm:$0xf]  ;;  %v3070_v27 = vld [vmem:[%s4949_s1 + $0x488] sm:$0xf0] }
 0x268   :  { %v2106_v2 = vpop.f32.mrf.mxu2  ;;  %v1850_v60 = vpop.f32.mrf.mxu0  ;;  %v2815_v20 = vld [vmem:[%s4949_s1 + $0x478] sm:$0xf]  ;;  %v2808_v30 = vor.u32 %v3070_v27, %v2807_v39 }
 0x269   :  { %v1849_v48 = vadd.f32 %v1848_v29, %v1720_v19  ;;  %v1979_v42 = vpop.f32.mrf.mxu1 }
 0x26b   :  { %v1978_v12 = vadd.f32 %v1977_v62, %v1849_v48  ;;  %v3066_v62 = vld [vmem:[%s4949_s1 + $0x46c] sm:$0xf]  ;;  %v2809_v48 = vld [vmem:[%s4949_s1 + $0x48c] sm:$0xf0] }
 0x26c   :  { %v2804_v41 = vor.u32 %v3066_v62, %v2801_v32 }
 0x26d   :  { %v2107_v10 = vadd.f32 %v2106_v2, %v1978_v12  ;;  %v3071_v2 = vld [vmem:[%s4949_s1 + $0x490] sm:$0xf0] }
 0x26e   :  { %v1721_v56 = vpop.f32.mrf.mxu3  ;;  %v2816_v3 = vor.u32 %v3071_v2, %v2815_v20 }
 0x26f   :  { %2197 = vst.msk [vmem:[%s4950_s2 + $0xa0] sm:$0xff] %vm2176_vm1, %v2107_v10  ;;  %v1722_v8 = vadd.f32 %v1721_v56, %v4961_v25 }
 0x270   :  { %v2108_v22 = vpop.f32.mrf.mxu2  ;;  %v1853_v50 = vpop.f32.mrf.mxu0 }
 0x271   :  { %v1851_v14 = vadd.f32 %v1850_v60, %v1722_v8  ;;  %v1982_v18 = vpop.f32.mrf.mxu1  ;;  %v3067_v60 = vld [vmem:[%s4949_s1 + $0x474] sm:$0xf] }
 0x272   :  { %v2812_v10 = vor.u32 %v3067_v60, %v2809_v48 }
 0x273   :  { %v1980_v55 = vadd.f32 %v1979_v42, %v1851_v14  ;;  %1763 = vmatmul.bf16.gmra.mxu3 %v2776_v34  ;;  %1892 = vmatmul.bf16.gmra.mxu0 %v2780_v40  ;;  %v2835_v14 = vld [vmem:[%s4949_s1 + $0x4a8] sm:$0xf] }
 0x274   :  { %2021 = vmatmul.bf16.gmra.mxu1 %v2784_v15  ;;  %v2829_v15 = vld [vmem:[%s4949_s1 + $0x4bc] sm:$0xf0] }
 0x275   :  { %2920 = vmatmul.msk.bf16.gmra.mxu2 %vm1200_vm0, %v2788_v21  ;;  %v2109_v7 = vadd.f32 %v2108_v22, %v1980_v55  ;;  %v3073_v21 = vld [vmem:[%s4949_s1 + $0x4a4] sm:$0xf] }
 0x276   :  { %v1724_v6 = vpop.f32.mrf.mxu3 }
 0x277   :  { %2198 = vst.msk [vmem:[%s4950_s2 + $0xa8] sm:$0xff] %vm2176_vm1, %v2109_v7  ;;  %v1725_v4 = vadd.f32 %v1724_v6, %v4962_v45  ;;  %v3078_v7 = vld [vmem:[%s4949_s1 + $0x4c8] sm:$0xf0]  ;;  %v2837_v45 = vld [vmem:[%s4949_s1 + $0x4c4] sm:$0xf0] }
 0x278   :  { %v2111_v9 = vpop.f32.mrf.mxu2  ;;  %v1855_v29 = vpop.f32.mrf.mxu0  ;;  %v3074_v6 = vld [vmem:[%s4949_s1 + $0x4ac] sm:$0xf] }
 0x279   :  { %v1854_v23 = vadd.f32 %v1853_v50, %v1725_v4  ;;  %v1984_v1 = vpop.f32.mrf.mxu1  ;;  %v2840_v32 = vor.u32 %v3074_v6, %v2837_v45 }
 0x27b   :  { %v1983_v33 = vadd.f32 %v1982_v18, %v1854_v23  ;;  %v2843_v18 = vld [vmem:[%s4949_s1 + $0x4b0] sm:$0xf]  ;;  %v2832_v23 = vor.u32 %v3073_v21, %v2829_v15 }
 0x27c   :  { %v2844_v62 = vor.u32 %v3078_v7, %v2843_v18 }
 0x27d   :  { %v2112_v19 = vadd.f32 %v2111_v9, %v1983_v33 }
 0x27e   :  { %v1726_v42 = vpop.f32.mrf.mxu3 }
 0x27f   :  { %2199 = vst.msk [vmem:[%s4950_s2 + $0xb0] sm:$0xff] %vm2176_vm1, %v2112_v19  ;;  %v1727_v12 = vadd.f32 %v1726_v42, %v4108_v58 }
 0x280   :  { %v2113_v37 = vpop.f32.mrf.mxu2  ;;  %v1858_v36 = vpop.f32.mrf.mxu0 }
 0x281   :  { %v1856_v5 = vadd.f32 %v1855_v29, %v1727_v12  ;;  %v1987_v61 = vpop.f32.mrf.mxu1 }
 0x283   :  { %v1985_v52 = vadd.f32 %v1984_v1, %v1856_v5  ;;  %1768 = vmatmul.bf16.gmra.mxu3 %v2804_v41  ;;  %1897 = vmatmul.bf16.gmra.mxu0 %v2808_v30  ;;  %v3080_v41 = vld [vmem:[%s4949_s1 + $0x4dc] sm:$0xf]  ;;  %v2857_v30 = vld [vmem:[%s4949_s1 + $0x4f4] sm:$0xf0]  ;;  %v3085_v5 = vld [vmem:[%s4949_s1 + $0x500] sm:$0xf0] }
 0x284   :  { %2026 = vmatmul.bf16.gmra.mxu1 %v2812_v10 }
 0x285   :  { %2921 = vmatmul.msk.bf16.gmra.mxu2 %vm1200_vm0, %v2816_v3  ;;  %v2114_v56 = vadd.f32 %v2113_v37, %v1985_v52  ;;  %v2871_v3 = vld [vmem:[%s4949_s1 + $0x4e8] sm:$0xf]  ;;  %v2865_v52 = vld [vmem:[%s4949_s1 + $0x4fc] sm:$0xf0] }
 0x286   :  { %v1729_v25 = vpop.f32.mrf.mxu3 }
 0x287   :  { %2200 = vst.msk [vmem:[%s4950_s2 + $0xb8] sm:$0xff] %vm2176_vm1, %v2114_v56  ;;  %v1730_v58 = vadd.f32 %v1729_v25, %v4115_v35  ;;  %v3077_v35 = vld [vmem:[%s4949_s1 + $0x4c0] sm:$0xf0] }
 0x288   :  { %v2116_v8 = vpop.f32.mrf.mxu2  ;;  %v1860_v22 = vpop.f32.mrf.mxu0  ;;  %v2836_v1 = vor.u32 %v3077_v35, %v2835_v14 }
 0x289   :  { %v1859_v34 = vadd.f32 %v1858_v36, %v1730_v58  ;;  %v1989_v40 = vpop.f32.mrf.mxu1  ;;  %v2863_v36 = vld [vmem:[%s4949_s1 + $0x4e0] sm:$0xf] }
 0x28b   :  { %v1988_v50 = vadd.f32 %v1987_v61, %v1859_v34  ;;  %v3081_v61 = vld [vmem:[%s4949_s1 + $0x4e4] sm:$0xf] }
 0x28d   :  { %v2117_v55 = vadd.f32 %v2116_v8, %v1988_v50  ;;  %v2860_v8 = vor.u32 %v3080_v41, %v2857_v30  ;;  %v2868_v50 = vor.u32 %v3081_v61, %v2865_v52 }
 0x28e   :  { %v1731_v4 = vpop.f32.mrf.mxu3 }
 0x28f   :  { %2201 = vst.msk [vmem:[%s4950_s2 + $0xc0] sm:$0xff] %vm2176_vm1, %v2117_v55  ;;  %v1732_v9 = vadd.f32 %v1731_v4, %v4145_v63 }
 0x290   :  { %v2118_v29 = vpop.f32.mrf.mxu2  ;;  %v1863_v33 = vpop.f32.mrf.mxu0 }
 0x291   :  { %v1861_v39 = vadd.f32 %v1860_v22, %v1732_v9  ;;  %v1992_v27 = vpop.f32.mrf.mxu1  ;;  %v3087_v9 = vld [vmem:[%s4949_s1 + $0x514] sm:$0xf] }
 0x293   :  { %v1990_v20 = vadd.f32 %v1989_v40, %v1861_v39  ;;  %1773 = vmatmul.bf16.gmra.mxu3 %v2832_v23  ;;  %1902 = vmatmul.bf16.gmra.mxu0 %v2836_v1  ;;  %v2872_v40 = vor.u32 %v3085_v5, %v2871_v3  ;;  %v2891_v23 = vld [vmem:[%s4949_s1 + $0x518] sm:$0xf]  ;;  %v2899_v1 = vld [vmem:[%s4949_s1 + $0x520] sm:$0xf] }
 0x294   :  { %2031 = vmatmul.bf16.gmra.mxu1 %v2840_v32  ;;  %v3088_v32 = vld [vmem:[%s4949_s1 + $0x51c] sm:$0xf]  ;;  %v2893_v39 = vld [vmem:[%s4949_s1 + $0x534] sm:$0xf0] }
 0x295   :  { %2922 = vmatmul.msk.bf16.gmra.mxu2 %vm1200_vm0, %v2844_v62  ;;  %v2119_v19 = vadd.f32 %v2118_v29, %v1990_v20  ;;  %v2885_v29 = vld [vmem:[%s4949_s1 + $0x52c] sm:$0xf0]  ;;  %v3092_v62 = vld [vmem:[%s4949_s1 + $0x538] sm:$0xf0] }
 0x296   :  { %v1734_v2 = vpop.f32.mrf.mxu3 }
 0x297   :  { %2202 = vst.msk [vmem:[%s4950_s2 + $0xc8] sm:$0xff] %vm2176_vm1, %v2119_v19  ;;  %v1735_v63 = vadd.f32 %v1734_v2, %v4152_v28  ;;  %v3084_v28 = vld [vmem:[%s4949_s1 + $0x4f8] sm:$0xf0]  ;;  %v2888_v2 = vor.u32 %v3087_v9, %v2885_v29 }
 0x298   :  { %v2121_v60 = vpop.f32.mrf.mxu2  ;;  %v1865_v48 = vpop.f32.mrf.mxu0  ;;  %v2864_v22 = vor.u32 %v3084_v28, %v2863_v36 }
 0x299   :  { %v1864_v42 = vadd.f32 %v1863_v33, %v1735_v63  ;;  %v1994_v12 = vpop.f32.mrf.mxu1 }
 0x29b   :  { %v1993_v37 = vadd.f32 %v1992_v27, %v1864_v42  ;;  %v2896_v42 = vor.u32 %v3088_v32, %v2893_v39 }
 0x29d   :  { %v2122_v10 = vadd.f32 %v2121_v60, %v1993_v37 }
 0x29e   :  { %v1736_v56 = vpop.f32.mrf.mxu3 }
 0x29f   :  { %2203 = vst.msk [vmem:[%s4950_s2 + $0xd0] sm:$0xff] %vm2176_vm1, %v2122_v10  ;;  %v1737_v25 = vadd.f32 %v1736_v56, %v4182_v44 }
 0x2a0   :  { %v2123_v58 = vpop.f32.mrf.mxu2  ;;  %v1868_v34 = vpop.f32.mrf.mxu0 }
 0x2a1   :  { %v1866_v21 = vadd.f32 %v1865_v48, %v1737_v25  ;;  %v1997_v15 = vpop.f32.mrf.mxu1  ;;  %v2900_v48 = vor.u32 %v3092_v62, %v2899_v1 }
 0x2a3   :  { %v1995_v14 = vadd.f32 %v1994_v12, %v1866_v21  ;;  %1778 = vmatmul.bf16.gmra.mxu3 %v2860_v8  ;;  %1907 = vmatmul.bf16.gmra.mxu0 %v2864_v22 }
 0x2a4   :  { %2036 = vmatmul.bf16.gmra.mxu1 %v2868_v50 }
 0x2a5   :  { %2923 = vmatmul.msk.bf16.gmra.mxu2 %vm1200_vm0, %v2872_v40  ;;  %v2124_v35 = vadd.f32 %v2123_v58, %v1995_v14 }
 0x2a6   :  { %v1739_v18 = vpop.f32.mrf.mxu3 }
 0x2a7   :  { %2204 = vst.msk [vmem:[%s4950_s2 + $0xd8] sm:$0xff] %vm2176_vm1, %v2124_v35  ;;  %v1740_v44 = vadd.f32 %v1739_v18, %v4189_v43  ;;  %v3091_v43 = vld [vmem:[%s4949_s1 + $0x530] sm:$0xf0] }
 0x2a8   :  { %v2126_v55 = vpop.f32.mrf.mxu2  ;;  %v1870_v7 = vpop.f32.mrf.mxu0  ;;  %v2892_v63 = vor.u32 %v3091_v43, %v2891_v23 }
 0x2a9   :  { %v1869_v6 = vadd.f32 %v1868_v34, %v1740_v44  ;;  %v1999_v45 = vpop.f32.mrf.mxu1 }
 0x2ab   :  { %v1998_v4 = vadd.f32 %v1997_v15, %v1869_v6 }
 0x2ad   :  { %v2127_v33 = vadd.f32 %v2126_v55, %v1998_v4 }
 0x2ae   :  { %v1741_v27 = vpop.f32.mrf.mxu3 }
 0x2af   :  { %2205 = vst.msk [vmem:[%s4950_s2 + $0xe0] sm:$0xff] %vm2176_vm1, %v2127_v33  ;;  %v1742_v20 = vadd.f32 %v1741_v27, %v4219_v54 }
 0x2b0   :  { %v2128_v19 = vpop.f32.mrf.mxu2  ;;  %v1873_v60 = vpop.f32.mrf.mxu0 }
 0x2b1   :  { %v1871_v12 = vadd.f32 %v1870_v7, %v1742_v20  ;;  %v2002_v37 = vpop.f32.mrf.mxu1 }
 0x2b3   :  { %v2000_v41 = vadd.f32 %v1999_v45, %v1871_v12  ;;  %1783 = vmatmul.bf16.gmra.mxu3 %v2888_v2  ;;  %1912 = vmatmul.bf16.gmra.mxu0 %v2892_v63 }
 0x2b4   :  { %2041 = vmatmul.bf16.gmra.mxu1 %v2896_v42 }
 0x2b5   :  { %2924 = vmatmul.msk.bf16.gmra.mxu2 %vm1200_vm0, %v2900_v48  ;;  %v2129_v30 = vadd.f32 %v2128_v19, %v2000_v41 }
 0x2b6   :  { %v1744_v36 = vpop.f32.mrf.mxu3 }
 0x2b7   :  { %2206 = vst.msk [vmem:[%s4950_s2 + $0xe8] sm:$0xff] %vm2176_vm1, %v2129_v30  ;;  %v1745_v54 = vadd.f32 %v1744_v36, %v4226_v16 }
 0x2b8   :  { %v2131_v28 = vpop.f32.mrf.mxu2  ;;  %v1875_v3 = vpop.f32.mrf.mxu0 }
 0x2b9   :  { %v1874_v10 = vadd.f32 %v1873_v60, %v1745_v54  ;;  %v2004_v5 = vpop.f32.mrf.mxu1 }
 0x2bb   :  { %v2003_v61 = vadd.f32 %v2002_v37, %v1874_v10 }
 0x2bd   :  { %v2132_v52 = vadd.f32 %v2131_v28, %v2003_v61 }
 0x2be   :  { %v1746_v56 = vpop.f32.mrf.mxu3 }
 0x2bf   :  { %2207 = vst.msk [vmem:[%s4950_s2 + $0xf0] sm:$0xff] %vm2176_vm1, %v2132_v52  ;;  %v1747_v25 = vadd.f32 %v1746_v56, %v4256_v31 }
 0x2c0   :  { %v2133_v58 = vpop.f32.mrf.mxu2  ;;  %v1878_v8 = vpop.f32.mrf.mxu0 }
 0x2c1   :  { %v1876_v22 = vadd.f32 %v1875_v3, %v1747_v25  ;;  %v2007_v34 = vpop.f32.mrf.mxu1 }
 0x2c3   :  { %v2005_v40 = vadd.f32 %v2004_v5, %v1876_v22 }
 0x2c5   :  { %v2134_v16 = vadd.f32 %v2133_v58, %v2005_v40 }
 0x2c6   :  { %v1749_v50 = vpop.f32.mrf.mxu3 }
 0x2c7   :  { %2208 = vst.msk [vmem:[%s4950_s2 + $0xf8] sm:$0xff] %vm2176_vm1, %v2134_v16  ;;  %v1750_v21 = vadd.f32 %v1749_v50, %v4263_v53 }
 0x2c8   :  { %v2136_v15 = vpop.f32.mrf.mxu2  ;;  %v1880_v14 = vpop.f32.mrf.mxu0 }
 0x2c9   :  { %v1879_v35 = vadd.f32 %v1878_v8, %v1750_v21  ;;  %v2009_v18 = vpop.f32.mrf.mxu1 }
 0x2cb   :  { %v2008_v44 = vadd.f32 %v2007_v34, %v1879_v35 }
 0x2cd   :  { %v2137_v31 = vadd.f32 %v2136_v15, %v2008_v44 }
 0x2ce   :  { %v1751_v55 = vpop.f32.mrf.mxu3 }
 0x2cf   :  { %2209 = vst.msk [vmem:[%s4950_s2 + $0x100] sm:$0xff] %vm2176_vm1, %v2137_v31  ;;  %v1752_v7 = vadd.f32 %v1751_v55, %v4293_v47 }
 0x2d0   :  { %v2138_v6 = vpop.f32.mrf.mxu2  ;;  %v1883_v45 = vpop.f32.mrf.mxu0 }
 0x2d1   :  { %v1881_v4 = vadd.f32 %v1880_v14, %v1752_v7  ;;  %v2012_v9 = vpop.f32.mrf.mxu1 }
 0x2d3   :  { %v2010_v29 = vadd.f32 %v2009_v18, %v1881_v4 }
 0x2d5   :  { %v2139_v53 = vadd.f32 %v2138_v6, %v2010_v29 }
 0x2d6   :  { %v1754_v23 = vpop.f32.mrf.mxu3 }
 0x2d7   :  { %2210 = vst.msk [vmem:[%s4950_s2 + $0x108] sm:$0xff] %vm2176_vm1, %v2139_v53  ;;  %v1755_v43 = vadd.f32 %v1754_v23, %v4300_v11 }
 0x2d8   :  { %v2141_v1 = vpop.f32.mrf.mxu2  ;;  %v1885_v33 = vpop.f32.mrf.mxu0 }
 0x2d9   :  { %v1884_v62 = vadd.f32 %v1883_v45, %v1755_v43  ;;  %v2014_v32 = vpop.f32.mrf.mxu1 }
 0x2db   :  { %v2013_v39 = vadd.f32 %v2012_v9, %v1884_v62 }
 0x2dd   :  { %v2142_v47 = vadd.f32 %v2141_v1, %v2013_v39 }
 0x2de   :  { %v1756_v27 = vpop.f32.mrf.mxu3 }
 0x2df   :  { %2211 = vst.msk [vmem:[%s4950_s2 + $0x110] sm:$0xff] %vm2176_vm1, %v2142_v47  ;;  %v1757_v20 = vadd.f32 %v1756_v27, %v4330_v51 }
 0x2e0   :  { %v2143_v19 = vpop.f32.mrf.mxu2  ;;  %v1888_v2 = vpop.f32.mrf.mxu0 }
 0x2e1   :  { %v1886_v63 = vadd.f32 %v1885_v33, %v1757_v20  ;;  %v2017_v60 = vpop.f32.mrf.mxu1 }
 0x2e3   :  { %v2015_v48 = vadd.f32 %v2014_v32, %v1886_v63 }
 0x2e5   :  { %v2144_v11 = vadd.f32 %v2143_v19, %v2015_v48 }
 0x2e6   :  { %v1759_v42 = vpop.f32.mrf.mxu3 }
 0x2e7   :  { %2212 = vst.msk [vmem:[%s4950_s2 + $0x118] sm:$0xff] %vm2176_vm1, %v2144_v11  ;;  %v1760_v12 = vadd.f32 %v1759_v42, %v4113_v13 }
 0x2e8   :  { %v2146_v37 = vpop.f32.mrf.mxu2  ;;  %v1890_v41 = vpop.f32.mrf.mxu0 }
 0x2e9   :  { %v1889_v30 = vadd.f32 %v1888_v2, %v1760_v12  ;;  %v2019_v36 = vpop.f32.mrf.mxu1 }
 0x2eb   :  { %v2018_v54 = vadd.f32 %v2017_v60, %v1889_v30 }
 0x2ed   :  { %v2147_v51 = vadd.f32 %v2146_v37, %v2018_v54 }
 0x2ee   :  { %v1761_v28 = vpop.f32.mrf.mxu3 }
 0x2ef   :  { %2213 = vst.msk [vmem:[%s4950_s2 + $0x120] sm:$0xff] %vm2176_vm1, %v2147_v51  ;;  %v1762_v3 = vadd.f32 %v1761_v28, %v4143_v49 }
 0x2f0   :  { %v2148_v10 = vpop.f32.mrf.mxu2  ;;  %v1893_v5 = vpop.f32.mrf.mxu0 }
 0x2f1   :  { %v1891_v61 = vadd.f32 %v1890_v41, %v1762_v3  ;;  %v2022_v52 = vpop.f32.mrf.mxu1 }
 0x2f3   :  { %v2020_v56 = vadd.f32 %v2019_v36, %v1891_v61 }
 0x2f5   :  { %v2149_v13 = vadd.f32 %v2148_v10, %v2020_v56 }
 0x2f6   :  { %v1764_v25 = vpop.f32.mrf.mxu3 }
 0x2f7   :  { %2214 = vst.msk [vmem:[%s4950_s2 + $0x128] sm:$0xff] %vm2176_vm1, %v2149_v13  ;;  %v1765_v58 = vadd.f32 %v1764_v25, %v4150_v38 }
 0x2f8   :  { %v2151_v8 = vpop.f32.mrf.mxu2  ;;  %v1895_v22 = vpop.f32.mrf.mxu0 }
 0x2f9   :  { %v1894_v34 = vadd.f32 %v1893_v5, %v1765_v58  ;;  %v2024_v40 = vpop.f32.mrf.mxu1  ;;  %v4963_v58 = vld [vmem:[#allocation7_spill] sm:$0xff] }
 0x2fb   :  { %v2023_v16 = vadd.f32 %v2022_v52, %v1894_v34 }
 0x2fd   :  { %v2152_v49 = vadd.f32 %v2151_v8, %v2023_v16 }
 0x2fe   :  { %v1766_v50 = vpop.f32.mrf.mxu3 }
 0x2ff   :  { %2215 = vst.msk [vmem:[%s4950_s2 + $0x130] sm:$0xff] %vm2176_vm1, %v2152_v49  ;;  %v1767_v21 = vadd.f32 %v1766_v50, %v4180_v0 }
 0x300   :  { %v2153_v15 = vpop.f32.mrf.mxu2  ;;  %v1898_v14 = vpop.f32.mrf.mxu0 }
 0x301   :  { %v1896_v35 = vadd.f32 %v1895_v22, %v1767_v21  ;;  %v2027_v18 = vpop.f32.mrf.mxu1 }
 0x303   :  { %v2025_v44 = vadd.f32 %v2024_v40, %v1896_v35 }
 0x305   :  { %v2154_v38 = vadd.f32 %v2153_v15, %v2025_v44 }
 0x306   :  { %v1769_v31 = vpop.f32.mrf.mxu3 }
 0x307   :  { %2216 = vst.msk [vmem:[%s4950_s2 + $0x138] sm:$0xff] %vm2176_vm1, %v2154_v38  ;;  %v1770_v55 = vadd.f32 %v1769_v31, %v4187_v59 }
 0x308   :  { %v2156_v7 = vpop.f32.mrf.mxu2  ;;  %v1900_v6 = vpop.f32.mrf.mxu0 }
 0x309   :  { %v1899_v45 = vadd.f32 %v1898_v14, %v1770_v55  ;;  %v2029_v4 = vpop.f32.mrf.mxu1 }
 0x30b   :  { %v2028_v9 = vadd.f32 %v2027_v18, %v1899_v45 }
 0x30d   :  { %v2157_v0 = vadd.f32 %v2156_v7, %v2028_v9 }
 0x30e   :  { %v1771_v29 = vpop.f32.mrf.mxu3 }
 0x30f   :  { %2217 = vst.msk [vmem:[%s4950_s2 + $0x140] sm:$0xff] %vm2176_vm1, %v2157_v0  ;;  %v1772_v53 = vadd.f32 %v1771_v29, %v4217_v26 }
 0x310   :  { %v2158_v23 = vpop.f32.mrf.mxu2  ;;  %v1903_v43 = vpop.f32.mrf.mxu0 }
 0x311   :  { %v1901_v1 = vadd.f32 %v1900_v6, %v1772_v53  ;;  %v2032_v33 = vpop.f32.mrf.mxu1 }
 0x313   :  { %v2030_v62 = vadd.f32 %v2029_v4, %v1901_v1 }
 0x315   :  { %v2159_v59 = vadd.f32 %v2158_v23, %v2030_v62 }
 0x316   :  { %v1774_v32 = vpop.f32.mrf.mxu3 }
 0x317   :  { %2218 = vst.msk [vmem:[%s4950_s2 + $0x148] sm:$0xff] %vm2176_vm1, %v2159_v59  ;;  %v1775_v39 = vadd.f32 %v1774_v32, %v4224_v17 }
 0x318   :  { %v2161_v47 = vpop.f32.mrf.mxu2  ;;  %v1905_v27 = vpop.f32.mrf.mxu0 }
 0x319   :  { %v1904_v20 = vadd.f32 %v1903_v43, %v1775_v39  ;;  %v2034_v19 = vpop.f32.mrf.mxu1 }
 0x31b   :  { %v2033_v2 = vadd.f32 %v2032_v33, %v1904_v20 }
 0x31d   :  { %v2162_v26 = vadd.f32 %v2161_v47, %v2033_v2 }
 0x31e   :  { %v1776_v63 = vpop.f32.mrf.mxu3 }
 0x31f   :  { %2219 = vst.msk [vmem:[%s4950_s2 + $0x150] sm:$0xff] %vm2176_vm1, %v2162_v26  ;;  %v1777_v60 = vadd.f32 %v1776_v63, %v4254_v57 }
 0x320   :  { %v2163_v48 = vpop.f32.mrf.mxu2  ;;  %v1908_v42 = vpop.f32.mrf.mxu0 }
 0x321   :  { %v1906_v11 = vadd.f32 %v1905_v27, %v1777_v60  ;;  %v2037_v37 = vpop.f32.mrf.mxu1 }
 0x323   :  { %v2035_v12 = vadd.f32 %v2034_v19, %v1906_v11 }
 0x325   :  { %v2164_v17 = vadd.f32 %v2163_v48, %v2035_v12 }
 0x326   :  { %v1779_v41 = vpop.f32.mrf.mxu3 }
 0x327   :  { %2220 = vst.msk [vmem:[%s4950_s2 + $0x158] sm:$0xff] %vm2176_vm1, %v2164_v17  ;;  %v1780_v30 = vadd.f32 %v1779_v41, %v4261_v24 }
 0x328   :  { %v2166_v36 = vpop.f32.mrf.mxu2  ;;  %v1910_v28 = vpop.f32.mrf.mxu0 }
 0x329   :  { %v1909_v54 = vadd.f32 %v1908_v42, %v1780_v30  ;;  %v2039_v57 = vpop.f32.mrf.mxu1 }
 0x32b   :  { %v2038_v51 = vadd.f32 %v2037_v37, %v1909_v54 }
 0x32d   :  { %v2167_v3 = vadd.f32 %v2166_v36, %v2038_v51 }
 0x32e   :  { %v1781_v10 = vpop.f32.mrf.mxu3 }
 0x32f   :  { %2221 = vst.msk [vmem:[%s4950_s2 + $0x160] sm:$0xff] %vm2176_vm1, %v2167_v3  ;;  %v1782_v5 = vadd.f32 %v1781_v10, %v4291_v46  ;;  %v4964_v46 = vld [vmem:[#allocation8_spill] sm:$0xff] }
 0x330   :  { %v2168_v61 = vpop.f32.mrf.mxu2  ;;  %v1913_v25 = vpop.f32.mrf.mxu0 }
 0x331   :  { %v1911_v52 = vadd.f32 %v1910_v28, %v1782_v5  ;;  %v2042_v22 = vpop.f32.mrf.mxu1 }
 0x333   :  { %v2040_v56 = vadd.f32 %v2039_v57, %v1911_v52 }
 0x335   :  { %v2169_v13 = vadd.f32 %v2168_v61, %v2040_v56 }
 0x336   :  { %v1784_v24 = vpop.f32.mrf.mxu3 }
 0x337   :  { %2222 = vst.msk [vmem:[%s4950_s2 + $0x168] sm:$0xff] %vm2176_vm1, %v2169_v13  ;;  %v1785_v8 = vadd.f32 %v1784_v24, %v4963_v58 }
 0x338   :  { %v2171_v40 = vpop.f32.mrf.mxu2  ;;  %v1915_v15 = vpop.f32.mrf.mxu0 }
 0x339   :  { %v1914_v34 = vadd.f32 %v1913_v25, %v1785_v8  ;;  %v2044_v35 = vpop.f32.mrf.mxu1 }
 0x33b   :  { %v2043_v16 = vadd.f32 %v2042_v22, %v1914_v34 }
 0x33d   :  { %v2172_v49 = vadd.f32 %v2171_v40, %v2043_v16 }
 0x33e   :  { %v1786_v50 = vpop.f32.mrf.mxu3 }
 0x33f   :  { %2223 = vst.msk [vmem:[%s4950_s2 + $0x170] sm:$0xff] %vm2176_vm1, %v2172_v49  ;;  %v1787_v21 = vadd.f32 %v1786_v50, %v4964_v46 }
 0x340   :  { %v2173_v44 = vpop.f32.mrf.mxu2 }
 0x341   :  { %v1916_v14 = vadd.f32 %v1915_v15, %v1787_v21 }
 0x343   :  { %v2045_v18 = vadd.f32 %v2044_v35, %v1916_v14 }
 0x345   :  { %v2174_v38 = vadd.f32 %v2173_v44, %v2045_v18 }
 0x347   :  { %2224 = vst.msk [vmem:[%s4950_s2 + $0x178] sm:$0xff] %vm2176_vm1, %v2174_v38 }

</bundles_post_ra>
